<compile_context>
chip_gen: v5e
topology: v5e:2x2
jax: 0.10.0
libtpu: 0.0.40
codegen_flags: <defaults>
</compile_context>

<pallas_src>
import jax
import jax.numpy as jnp
from jax import lax
from jax.experimental import pallas as pl
from jax.experimental.pallas import tpu as pltpu


def _sigmoid_via_tanh(z):
    # sigmoid(z) == 0.5 * tanh(0.5 * z) + 0.5 ; tanh is a single EUP op.
    return 0.5 * jnp.tanh(0.5 * z) + 0.5


def _lstm2_kernel(xt_ref, wih0_ref, whh0_ref, b0_ref,
                  wih1_ref, whh1_ref, b1_ref, out_ref):
    """Single-invocation kernel: fused 2-layer LSTM recurrence over time.

    xt_ref   : (T, BN, D)   time-major input features
    wih0_ref : (D, 4H)      layer-0 input weights (transposed)
    whh0_ref : (H, 4H)      layer-0 recurrent weights (transposed)
    b0_ref   : (1, 4H)      layer-0 combined bias (b_ih + b_hh)
    wih1_ref : (H, 4H)      layer-1 input weights (transposed)
    whh1_ref : (H, 4H)      layer-1 recurrent weights (transposed)
    b1_ref   : (1, 4H)      layer-1 combined bias
    out_ref  : (BN, H)      final hidden state of the last layer
    """
    T = xt_ref.shape[0]
    BN, H = out_ref.shape

    # Hoist all weight/bias loads out of the time loop.
    wih0 = wih0_ref[...]
    whh0 = whh0_ref[...]
    b0 = b0_ref[...]
    wih1 = wih1_ref[...]
    whh1 = whh1_ref[...]
    b1 = b1_ref[...]

    def cell_from_gates(gates, c_prev):
        # PyTorch gate order: input, forget, cell(g), output
        i = _sigmoid_via_tanh(gates[:, 0 * H:1 * H])
        f = _sigmoid_via_tanh(gates[:, 1 * H:2 * H])
        g = jnp.tanh(gates[:, 2 * H:3 * H])
        o = _sigmoid_via_tanh(gates[:, 3 * H:4 * H])
        c_new = f * c_prev + i * g
        h_new = o * jnp.tanh(c_new)
        return h_new, c_new

    def step(t, carry):
        h0, c0, h1, c1 = carry
        x_t = xt_ref[t]                                     # (BN, D) contiguous slab
        # Layer 0: the x_t push is carry-independent -> schedules ahead of the chain.
        g0 = (jnp.dot(x_t, wih0, preferred_element_type=jnp.float32)
              + jnp.dot(h0, whh0, preferred_element_type=jnp.float32)
              + b0)
        h0, c0 = cell_from_gates(g0, c0)
        # Layer 1: two independent MXU pushes; no cross-lane concat on the hot path.
        g1 = (jnp.dot(h0, wih1, preferred_element_type=jnp.float32)
              + jnp.dot(h1, whh1, preferred_element_type=jnp.float32)
              + b1)
        h1, c1 = cell_from_gates(g1, c1)
        return (h0, c0, h1, c1)

    z = jnp.zeros((BN, H), jnp.float32)
    unroll = T if T <= 32 else 8   # full unroll for short static T (LLO visibility)
    _, _, h1, _ = lax.fori_loop(0, T, step, (z, z, z, z), unroll=unroll)
    out_ref[...] = h1.astype(out_ref.dtype)


def lstm_encoder_forward(x, params):
    """x: (BN, T, D) float32. params: transposed weights / combined biases."""
    BN, T, D = x.shape
    H = params["whh0"].shape[0]

    # Time-major layout so each step reads a contiguous (BN, D) slab.
    xt = jnp.swapaxes(x, 0, 1)                                # (T, BN, D)

    full2 = lambda i: (0, 0)
    full3 = lambda i: (0, 0, 0)

    return pl.pallas_call(
        _lstm2_kernel,
        out_shape=jax.ShapeDtypeStruct((BN, H), jnp.float32),
        grid_spec=pltpu.PrefetchScalarGridSpec(
            num_scalar_prefetch=0,
            grid=(1,),  # single grid step; recurrence is an in-kernel unrolled loop
            in_specs=[
                pl.BlockSpec((T, BN, D), full3),       # time-major inputs
                pl.BlockSpec((D, 4 * H), full2),       # W_ih layer0 (transposed)
                pl.BlockSpec((H, 4 * H), full2),       # W_hh layer0 (transposed)
                pl.BlockSpec((1, 4 * H), full2),       # b_ih0 + b_hh0
                pl.BlockSpec((H, 4 * H), full2),       # W_ih layer1 (transposed)
                pl.BlockSpec((H, 4 * H), full2),       # W_hh layer1 (transposed)
                pl.BlockSpec((1, 4 * H), full2),       # b_ih1 + b_hh1
            ],
            out_specs=pl.BlockSpec((BN, H), full2),
        ),
        compiler_params=pltpu.CompilerParams(
            dimension_semantics=("arbitrary",),
            vmem_limit_bytes=64 * 1024 * 1024,
        ),
    )(xt, params["wih0"], params["whh0"], params["b0"],
      params["wih1"], params["whh1"], params["b1"])


def init_lstm_params(key, input_size, hidden_size):
    """Deterministic init mirroring nn.LSTM shapes (uniform(-1/sqrt(H), 1/sqrt(H)))."""
    H = hidden_size
    k = 1.0 / jnp.sqrt(jnp.float32(H))
    keys = jax.random.split(key, 8)
    u = lambda kk, shape: jax.random.uniform(kk, shape, jnp.float32, -k, k)
    # layer 0
    w_ih0 = u(keys[0], (4 * H, input_size))
    w_hh0 = u(keys[1], (4 * H, H))
    b_ih0 = u(keys[2], (4 * H,))
    b_hh0 = u(keys[3], (4 * H,))
    # layer 1
    w_ih1 = u(keys[4], (4 * H, H))
    w_hh1 = u(keys[5], (4 * H, H))
    b_ih1 = u(keys[6], (4 * H,))
    b_hh1 = u(keys[7], (4 * H,))
    return {
        "wih0": w_ih0.T, "whh0": w_hh0.T, "b0": (b_ih0 + b_hh0).reshape(1, 4 * H),
        "wih1": w_ih1.T, "whh1": w_hh1.T, "b1": (b_ih1 + b_hh1).reshape(1, 4 * H),
    }


def lstm_encoder_reference(x, params):
    """Pure-JAX reference of the same 2-layer LSTM (PyTorch gate order i,f,g,o)."""
    BN, T, D = x.shape
    H = params["whh0"].shape[0]

    def cell(inp, h, c, wih, whh, b):
        gates = inp @ wih + h @ whh + b
        i = jax.nn.sigmoid(gates[:, 0 * H:1 * H])
        f = jax.nn.sigmoid(gates[:, 1 * H:2 * H])
        g = jnp.tanh(gates[:, 2 * H:3 * H])
        o = jax.nn.sigmoid(gates[:, 3 * H:4 * H])
        c = f * c + i * g
        h = o * jnp.tanh(c)
        return h, c

    def step(carry, xt):
        h0, c0, h1, c1 = carry
        h0, c0 = cell(xt, h0, c0, params["wih0"], params["whh0"], params["b0"])
        h1, c1 = cell(h0, h1, c1, params["wih1"], params["whh1"], params["b1"])
        return (h0, c0, h1, c1), None

    z = jnp.zeros((BN, H), jnp.float32)
    (h0, c0, h1, c1), _ = jax.lax.scan(step, (z, z, z, z), jnp.swapaxes(x, 0, 1))
    return h1


if __name__ == "__main__":
    # Small shapes implied by the module's forward: x is (B*N, T, input_size).
    B, N, T = 2, 4, 8
    BN = B * N
    input_size, hidden_size = 16, 32

    key = jax.random.PRNGKey(0)
    kx, kp = jax.random.split(key)
    x = jax.random.normal(kx, (BN, T, input_size), jnp.float32)
    params = init_lstm_params(kp, input_size, hidden_size)

    out = lstm_encoder_forward(x, params)
    out = jax.block_until_ready(out)

    ref = lstm_encoder_reference(x, params)
    assert out.shape == (BN, hidden_size)
    assert jnp.allclose(out, ref, atol=1e-4, rtol=1e-4), "mismatch vs reference"

    print("KERNEL_OK")
</pallas_src>

<mosaic_0001>
module attributes {stable_mosaic.version = 11 : i64} {
  func.func @_lstm2_kernel(%arg0: i32, %arg1: memref<8x8x16xf32, #tpu.memory_space<vmem>>, %arg2: memref<16x128xf32, #tpu.memory_space<vmem>>, %arg3: memref<32x128xf32, #tpu.memory_space<vmem>>, %arg4: memref<1x128xf32, #tpu.memory_space<vmem>>, %arg5: memref<32x128xf32, #tpu.memory_space<vmem>>, %arg6: memref<32x128xf32, #tpu.memory_space<vmem>>, %arg7: memref<1x128xf32, #tpu.memory_space<vmem>>, %arg8: memref<8x32xf32, #tpu.memory_space<vmem>>) attributes {dimension_semantics = [#tpu.dimension_semantics<arbitrary>], iteration_bounds = array<i64: 1>, scalar_prefetch = 0 : i64, scratch_operands = 0 : i64, tpu.core_type = #tpu.core_type<tc>, window_params = [{pipeline_mode = #tpu.pipeline_mode<synchronous>, transform_indices = @transform_0, window_bounds = array<i64: 8, 8, 16>}, {pipeline_mode = #tpu.pipeline_mode<synchronous>, transform_indices = @transform_1, window_bounds = array<i64: 16, 128>}, {pipeline_mode = #tpu.pipeline_mode<synchronous>, transform_indices = @transform_2, window_bounds = array<i64: 32, 128>}, {pipeline_mode = #tpu.pipeline_mode<synchronous>, transform_indices = @transform_3, window_bounds = array<i64: 1, 128>}, {pipeline_mode = #tpu.pipeline_mode<synchronous>, transform_indices = @transform_4, window_bounds = array<i64: 32, 128>}, {pipeline_mode = #tpu.pipeline_mode<synchronous>, transform_indices = @transform_5, window_bounds = array<i64: 32, 128>}, {pipeline_mode = #tpu.pipeline_mode<synchronous>, transform_indices = @transform_6, window_bounds = array<i64: 1, 128>}, {pipeline_mode = #tpu.pipeline_mode<synchronous>, transform_indices = @transform_7, window_bounds = array<i64: 8, 32>}]} {
    %c0 = arith.constant 0 : index
    %c0_0 = arith.constant 0 : index
    %0 = vector.load %arg2[%c0, %c0_0] : memref<16x128xf32, #tpu.memory_space<vmem>>, vector<16x128xf32>
    %c0_1 = arith.constant 0 : index
    %c0_2 = arith.constant 0 : index
    %1 = vector.load %arg3[%c0_1, %c0_2] : memref<32x128xf32, #tpu.memory_space<vmem>>, vector<32x128xf32>
    %c0_3 = arith.constant 0 : index
    %c0_4 = arith.constant 0 : index
    %2 = vector.load %arg4[%c0_3, %c0_4] : memref<1x128xf32, #tpu.memory_space<vmem>>, vector<1x128xf32>
    %c0_5 = arith.constant 0 : index
    %c0_6 = arith.constant 0 : index
    %3 = vector.load %arg5[%c0_5, %c0_6] : memref<32x128xf32, #tpu.memory_space<vmem>>, vector<32x128xf32>
    %c0_7 = arith.constant 0 : index
    %c0_8 = arith.constant 0 : index
    %4 = vector.load %arg6[%c0_7, %c0_8] : memref<32x128xf32, #tpu.memory_space<vmem>>, vector<32x128xf32>
    %c0_9 = arith.constant 0 : index
    %c0_10 = arith.constant 0 : index
    %5 = vector.load %arg7[%c0_9, %c0_10] : memref<1x128xf32, #tpu.memory_space<vmem>>, vector<1x128xf32>
    %cst = arith.constant 0.000000e+00 : f32
    %6 = vector.broadcast %cst : f32 to vector<8x32xf32>
    %c0_i32 = arith.constant 0 : i32
    %7 = arith.index_cast %c0_i32 : i32 to index
    %c0_11 = arith.constant 0 : index
    %c0_12 = arith.constant 0 : index
    %8 = vector.load %arg1[%7, %c0_11, %c0_12] : memref<8x8x16xf32, #tpu.memory_space<vmem>>, vector<1x8x16xf32>
    %9 = vector.shape_cast %8 : vector<1x8x16xf32> to vector<8x16xf32>
    %cst_13 = arith.constant dense<0.000000e+00> : vector<8x128xf32>
    %10 = tpu.matmul %9, %0, %cst_13 {dimension_numbers = #tpu.dot_dimension_numbers<[1], [0], [0], [1], [0, 0, 1, 1], [], []>} : vector<8x16xf32>, vector<16x128xf32>, vector<8x128xf32> -> vector<8x128xf32>
    %cst_14 = arith.constant dense<0.000000e+00> : vector<8x128xf32>
    %11 = tpu.matmul %6, %1, %cst_14 {dimension_numbers = #tpu.dot_dimension_numbers<[1], [0], [0], [1], [0, 0, 1, 1], [], []>} : vector<8x32xf32>, vector<32x128xf32>, vector<8x128xf32> -> vector<8x128xf32>
    %12 = arith.addf %10, %11 : vector<8x128xf32>
    %13 = vector.broadcast %2 : vector<1x128xf32> to vector<8x128xf32>
    %14 = arith.addf %12, %13 : vector<8x128xf32>
    %15 = vector.extract_strided_slice %14 {offsets = [0, 0], sizes = [8, 32], strides = [1, 1]} : vector<8x128xf32> to vector<8x32xf32>
    %cst_15 = arith.constant 5.000000e-01 : f32
    %16 = vector.broadcast %cst_15 : f32 to vector<8x32xf32>
    %17 = arith.mulf %16, %15 : vector<8x32xf32>
    %18 = math.tanh %17 : vector<8x32xf32>
    %cst_16 = arith.constant 5.000000e-01 : f32
    %19 = vector.broadcast %cst_16 : f32 to vector<8x32xf32>
    %20 = arith.mulf %19, %18 : vector<8x32xf32>
    %cst_17 = arith.constant 5.000000e-01 : f32
    %21 = vector.broadcast %cst_17 : f32 to vector<8x32xf32>
    %22 = arith.addf %20, %21 : vector<8x32xf32>
    %23 = vector.extract_strided_slice %14 {offsets = [0, 32], sizes = [8, 32], strides = [1, 1]} : vector<8x128xf32> to vector<8x32xf32>
    %cst_18 = arith.constant 5.000000e-01 : f32
    %24 = vector.broadcast %cst_18 : f32 to vector<8x32xf32>
    %25 = arith.mulf %24, %23 : vector<8x32xf32>
    %26 = math.tanh %25 : vector<8x32xf32>
    %cst_19 = arith.constant 5.000000e-01 : f32
    %27 = vector.broadcast %cst_19 : f32 to vector<8x32xf32>
    %28 = arith.mulf %27, %26 : vector<8x32xf32>
    %cst_20 = arith.constant 5.000000e-01 : f32
    %29 = vector.broadcast %cst_20 : f32 to vector<8x32xf32>
    %30 = arith.addf %28, %29 : vector<8x32xf32>
    %31 = vector.extract_strided_slice %14 {offsets = [0, 64], sizes = [8, 32], strides = [1, 1]} : vector<8x128xf32> to vector<8x32xf32>
    %32 = math.tanh %31 : vector<8x32xf32>
    %33 = vector.extract_strided_slice %14 {offsets = [0, 96], sizes = [8, 32], strides = [1, 1]} : vector<8x128xf32> to vector<8x32xf32>
    %cst_21 = arith.constant 5.000000e-01 : f32
    %34 = vector.broadcast %cst_21 : f32 to vector<8x32xf32>
    %35 = arith.mulf %34, %33 : vector<8x32xf32>
    %36 = math.tanh %35 : vector<8x32xf32>
    %cst_22 = arith.constant 5.000000e-01 : f32
    %37 = vector.broadcast %cst_22 : f32 to vector<8x32xf32>
    %38 = arith.mulf %37, %36 : vector<8x32xf32>
    %cst_23 = arith.constant 5.000000e-01 : f32
    %39 = vector.broadcast %cst_23 : f32 to vector<8x32xf32>
    %40 = arith.addf %38, %39 : vector<8x32xf32>
    %41 = arith.mulf %30, %6 : vector<8x32xf32>
    %42 = arith.mulf %22, %32 : vector<8x32xf32>
    %43 = arith.addf %41, %42 : vector<8x32xf32>
    %44 = math.tanh %43 : vector<8x32xf32>
    %45 = arith.mulf %40, %44 : vector<8x32xf32>
    %cst_24 = arith.constant dense<0.000000e+00> : vector<8x128xf32>
    %46 = tpu.matmul %45, %3, %cst_24 {dimension_numbers = #tpu.dot_dimension_numbers<[1], [0], [0], [1], [0, 0, 1, 1], [], []>} : vector<8x32xf32>, vector<32x128xf32>, vector<8x128xf32> -> vector<8x128xf32>
    %cst_25 = arith.constant dense<0.000000e+00> : vector<8x128xf32>
    %47 = tpu.matmul %6, %4, %cst_25 {dimension_numbers = #tpu.dot_dimension_numbers<[1], [0], [0], [1], [0, 0, 1, 1], [], []>} : vector<8x32xf32>, vector<32x128xf32>, vector<8x128xf32> -> vector<8x128xf32>
    %48 = arith.addf %46, %47 : vector<8x128xf32>
    %49 = vector.broadcast %5 : vector<1x128xf32> to vector<8x128xf32>
    %50 = arith.addf %48, %49 : vector<8x128xf32>
    %51 = vector.extract_strided_slice %50 {offsets = [0, 0], sizes = [8, 32], strides = [1, 1]} : vector<8x128xf32> to vector<8x32xf32>
    %cst_26 = arith.constant 5.000000e-01 : f32
    %52 = vector.broadcast %cst_26 : f32 to vector<8x32xf32>
    %53 = arith.mulf %52, %51 : vector<8x32xf32>
    %54 = math.tanh %53 : vector<8x32xf32>
    %cst_27 = arith.constant 5.000000e-01 : f32
    %55 = vector.broadcast %cst_27 : f32 to vector<8x32xf32>
    %56 = arith.mulf %55, %54 : vector<8x32xf32>
    %cst_28 = arith.constant 5.000000e-01 : f32
    %57 = vector.broadcast %cst_28 : f32 to vector<8x32xf32>
    %58 = arith.addf %56, %57 : vector<8x32xf32>
    %59 = vector.extract_strided_slice %50 {offsets = [0, 32], sizes = [8, 32], strides = [1, 1]} : vector<8x128xf32> to vector<8x32xf32>
    %cst_29 = arith.constant 5.000000e-01 : f32
    %60 = vector.broadcast %cst_29 : f32 to vector<8x32xf32>
    %61 = arith.mulf %60, %59 : vector<8x32xf32>
    %62 = math.tanh %61 : vector<8x32xf32>
    %cst_30 = arith.constant 5.000000e-01 : f32
    %63 = vector.broadcast %cst_30 : f32 to vector<8x32xf32>
    %64 = arith.mulf %63, %62 : vector<8x32xf32>
    %cst_31 = arith.constant 5.000000e-01 : f32
    %65 = vector.broadcast %cst_31 : f32 to vector<8x32xf32>
    %66 = arith.addf %64, %65 : vector<8x32xf32>
    %67 = vector.extract_strided_slice %50 {offsets = [0, 64], sizes = [8, 32], strides = [1, 1]} : vector<8x128xf32> to vector<8x32xf32>
    %68 = math.tanh %67 : vector<8x32xf32>
    %69 = vector.extract_strided_slice %50 {offsets = [0, 96], sizes = [8, 32], strides = [1, 1]} : vector<8x128xf32> to vector<8x32xf32>
    %cst_32 = arith.constant 5.000000e-01 : f32
    %70 = vector.broadcast %cst_32 : f32 to vector<8x32xf32>
    %71 = arith.mulf %70, %69 : vector<8x32xf32>
    %72 = math.tanh %71 : vector<8x32xf32>
    %cst_33 = arith.constant 5.000000e-01 : f32
    %73 = vector.broadcast %cst_33 : f32 to vector<8x32xf32>
    %74 = arith.mulf %73, %72 : vector<8x32xf32>
    %cst_34 = arith.constant 5.000000e-01 : f32
    %75 = vector.broadcast %cst_34 : f32 to vector<8x32xf32>
    %76 = arith.addf %74, %75 : vector<8x32xf32>
    %77 = arith.mulf %66, %6 : vector<8x32xf32>
    %78 = arith.mulf %58, %68 : vector<8x32xf32>
    %79 = arith.addf %77, %78 : vector<8x32xf32>
    %80 = math.tanh %79 : vector<8x32xf32>
    %81 = arith.mulf %76, %80 : vector<8x32xf32>
    %c1_i32 = arith.constant 1 : i32
    %82 = arith.index_cast %c1_i32 : i32 to index
    %c0_35 = arith.constant 0 : index
    %c0_36 = arith.constant 0 : index
    %83 = vector.load %arg1[%82, %c0_35, %c0_36] : memref<8x8x16xf32, #tpu.memory_space<vmem>>, vector<1x8x16xf32>
    %84 = vector.shape_cast %83 : vector<1x8x16xf32> to vector<8x16xf32>
    %cst_37 = arith.constant dense<0.000000e+00> : vector<8x128xf32>
    %85 = tpu.matmul %84, %0, %cst_37 {dimension_numbers = #tpu.dot_dimension_numbers<[1], [0], [0], [1], [0, 0, 1, 1], [], []>} : vector<8x16xf32>, vector<16x128xf32>, vector<8x128xf32> -> vector<8x128xf32>
    %cst_38 = arith.constant dense<0.000000e+00> : vector<8x128xf32>
    %86 = tpu.matmul %45, %1, %cst_38 {dimension_numbers = #tpu.dot_dimension_numbers<[1], [0], [0], [1], [0, 0, 1, 1], [], []>} : vector<8x32xf32>, vector<32x128xf32>, vector<8x128xf32> -> vector<8x128xf32>
    %87 = arith.addf %85, %86 : vector<8x128xf32>
    %88 = vector.broadcast %2 : vector<1x128xf32> to vector<8x128xf32>
    %89 = arith.addf %87, %88 : vector<8x128xf32>
    %90 = vector.extract_strided_slice %89 {offsets = [0, 0], sizes = [8, 32], strides = [1, 1]} : vector<8x128xf32> to vector<8x32xf32>
    %cst_39 = arith.constant 5.000000e-01 : f32
    %91 = vector.broadcast %cst_39 : f32 to vector<8x32xf32>
    %92 = arith.mulf %91, %90 : vector<8x32xf32>
    %93 = math.tanh %92 : vector<8x32xf32>
    %cst_40 = arith.constant 5.000000e-01 : f32
    %94 = vector.broadcast %cst_40 : f32 to vector<8x32xf32>
    %95 = arith.mulf %94, %93 : vector<8x32xf32>
    %cst_41 = arith.constant 5.000000e-01 : f32
    %96 = vector.broadcast %cst_41 : f32 to vector<8x32xf32>
    %97 = arith.addf %95, %96 : vector<8x32xf32>
    %98 = vector.extract_strided_slice %89 {offsets = [0, 32], sizes = [8, 32], strides = [1, 1]} : vector<8x128xf32> to vector<8x32xf32>
    %cst_42 = arith.constant 5.000000e-01 : f32
    %99 = vector.broadcast %cst_42 : f32 to vector<8x32xf32>
    %100 = arith.mulf %99, %98 : vector<8x32xf32>
    %101 = math.tanh %100 : vector<8x32xf32>
    %cst_43 = arith.constant 5.000000e-01 : f32
    %102 = vector.broadcast %cst_43 : f32 to vector<8x32xf32>
    %103 = arith.mulf %102, %101 : vector<8x32xf32>
    %cst_44 = arith.constant 5.000000e-01 : f32
    %104 = vector.broadcast %cst_44 : f32 to vector<8x32xf32>
    %105 = arith.addf %103, %104 : vector<8x32xf32>
    %106 = vector.extract_strided_slice %89 {offsets = [0, 64], sizes = [8, 32], strides = [1, 1]} : vector<8x128xf32> to vector<8x32xf32>
    %107 = math.tanh %106 : vector<8x32xf32>
    %108 = vector.extract_strided_slice %89 {offsets = [0, 96], sizes = [8, 32], strides = [1, 1]} : vector<8x128xf32> to vector<8x32xf32>
    %cst_45 = arith.constant 5.000000e-01 : f32
    %109 = vector.broadcast %cst_45 : f32 to vector<8x32xf32>
    %110 = arith.mulf %109, %108 : vector<8x32xf32>
    %111 = math.tanh %110 : vector<8x32xf32>
    %cst_46 = arith.constant 5.000000e-01 : f32
    %112 = vector.broadcast %cst_46 : f32 to vector<8x32xf32>
    %113 = arith.mulf %112, %111 : vector<8x32xf32>
    %cst_47 = arith.constant 5.000000e-01 : f32
    %114 = vector.broadcast %cst_47 : f32 to vector<8x32xf32>
    %115 = arith.addf %113, %114 : vector<8x32xf32>
    %116 = arith.mulf %105, %43 : vector<8x32xf32>
    %117 = arith.mulf %97, %107 : vector<8x32xf32>
    %118 = arith.addf %116, %117 : vector<8x32xf32>
    %119 = math.tanh %118 : vector<8x32xf32>
    %120 = arith.mulf %115, %119 : vector<8x32xf32>
    %cst_48 = arith.constant dense<0.000000e+00> : vector<8x128xf32>
    %121 = tpu.matmul %120, %3, %cst_48 {dimension_numbers = #tpu.dot_dimension_numbers<[1], [0], [0], [1], [0, 0, 1, 1], [], []>} : vector<8x32xf32>, vector<32x128xf32>, vector<8x128xf32> -> vector<8x128xf32>
    %cst_49 = arith.constant dense<0.000000e+00> : vector<8x128xf32>
    %122 = tpu.matmul %81, %4, %cst_49 {dimension_numbers = #tpu.dot_dimension_numbers<[1], [0], [0], [1], [0, 0, 1, 1], [], []>} : vector<8x32xf32>, vector<32x128xf32>, vector<8x128xf32> -> vector<8x128xf32>
    %123 = arith.addf %121, %122 : vector<8x128xf32>
    %124 = vector.broadcast %5 : vector<1x128xf32> to vector<8x128xf32>
    %125 = arith.addf %123, %124 : vector<8x128xf32>
    %126 = vector.extract_strided_slice %125 {offsets = [0, 0], sizes = [8, 32], strides = [1, 1]} : vector<8x128xf32> to vector<8x32xf32>
    %cst_50 = arith.constant 5.000000e-01 : f32
    %127 = vector.broadcast %cst_50 : f32 to vector<8x32xf32>
    %128 = arith.mulf %127, %126 : vector<8x32xf32>
    %129 = math.tanh %128 : vector<8x32xf32>
    %cst_51 = arith.constant 5.000000e-01 : f32
    %130 = vector.broadcast %cst_51 : f32 to vector<8x32xf32>
    %131 = arith.mulf %130, %129 : vector<8x32xf32>
    %cst_52 = arith.constant 5.000000e-01 : f32
    %132 = vector.broadcast %cst_52 : f32 to vector<8x32xf32>
    %133 = arith.addf %131, %132 : vector<8x32xf32>
    %134 = vector.extract_strided_slice %125 {offsets = [0, 32], sizes = [8, 32], strides = [1, 1]} : vector<8x128xf32> to vector<8x32xf32>
    %cst_53 = arith.constant 5.000000e-01 : f32
    %135 = vector.broadcast %cst_53 : f32 to vector<8x32xf32>
    %136 = arith.mulf %135, %134 : vector<8x32xf32>
    %137 = math.tanh %136 : vector<8x32xf32>
    %cst_54 = arith.constant 5.000000e-01 : f32
    %138 = vector.broadcast %cst_54 : f32 to vector<8x32xf32>
    %139 = arith.mulf %138, %137 : vector<8x32xf32>
    %cst_55 = arith.constant 5.000000e-01 : f32
    %140 = vector.broadcast %cst_55 : f32 to vector<8x32xf32>
    %141 = arith.addf %139, %140 : vector<8x32xf32>
    %142 = vector.extract_strided_slice %125 {offsets = [0, 64], sizes = [8, 32], strides = [1, 1]} : vector<8x128xf32> to vector<8x32xf32>
    %143 = math.tanh %142 : vector<8x32xf32>
    %144 = vector.extract_strided_slice %125 {offsets = [0, 96], sizes = [8, 32], strides = [1, 1]} : vector<8x128xf32> to vector<8x32xf32>
    %cst_56 = arith.constant 5.000000e-01 : f32
    %145 = vector.broadcast %cst_56 : f32 to vector<8x32xf32>
    %146 = arith.mulf %145, %144 : vector<8x32xf32>
    %147 = math.tanh %146 : vector<8x32xf32>
    %cst_57 = arith.constant 5.000000e-01 : f32
    %148 = vector.broadcast %cst_57 : f32 to vector<8x32xf32>
    %149 = arith.mulf %148, %147 : vector<8x32xf32>
    %cst_58 = arith.constant 5.000000e-01 : f32
    %150 = vector.broadcast %cst_58 : f32 to vector<8x32xf32>
    %151 = arith.addf %149, %150 : vector<8x32xf32>
    %152 = arith.mulf %141, %79 : vector<8x32xf32>
    %153 = arith.mulf %133, %143 : vector<8x32xf32>
    %154 = arith.addf %152, %153 : vector<8x32xf32>
    %155 = math.tanh %154 : vector<8x32xf32>
    %156 = arith.mulf %151, %155 : vector<8x32xf32>
    %c2_i32 = arith.constant 2 : i32
    %157 = arith.index_cast %c2_i32 : i32 to index
    %c0_59 = arith.constant 0 : index
    %c0_60 = arith.constant 0 : index
    %158 = vector.load %arg1[%157, %c0_59, %c0_60] : memref<8x8x16xf32, #tpu.memory_space<vmem>>, vector<1x8x16xf32>
    %159 = vector.shape_cast %158 : vector<1x8x16xf32> to vector<8x16xf32>
    %cst_61 = arith.constant dense<0.000000e+00> : vector<8x128xf32>
    %160 = tpu.matmul %159, %0, %cst_61 {dimension_numbers = #tpu.dot_dimension_numbers<[1], [0], [0], [1], [0, 0, 1, 1], [], []>} : vector<8x16xf32>, vector<16x128xf32>, vector<8x128xf32> -> vector<8x128xf32>
    %cst_62 = arith.constant dense<0.000000e+00> : vector<8x128xf32>
    %161 = tpu.matmul %120, %1, %cst_62 {dimension_numbers = #tpu.dot_dimension_numbers<[1], [0], [0], [1], [0, 0, 1, 1], [], []>} : vector<8x32xf32>, vector<32x128xf32>, vector<8x128xf32> -> vector<8x128xf32>
    %162 = arith.addf %160, %161 : vector<8x128xf32>
    %163 = vector.broadcast %2 : vector<1x128xf32> to vector<8x128xf32>
    %164 = arith.addf %162, %163 : vector<8x128xf32>
    %165 = vector.extract_strided_slice %164 {offsets = [0, 0], sizes = [8, 32], strides = [1, 1]} : vector<8x128xf32> to vector<8x32xf32>
    %cst_63 = arith.constant 5.000000e-01 : f32
    %166 = vector.broadcast %cst_63 : f32 to vector<8x32xf32>
    %167 = arith.mulf %166, %165 : vector<8x32xf32>
    %168 = math.tanh %167 : vector<8x32xf32>
    %cst_64 = arith.constant 5.000000e-01 : f32
    %169 = vector.broadcast %cst_64 : f32 to vector<8x32xf32>
    %170 = arith.mulf %169, %168 : vector<8x32xf32>
    %cst_65 = arith.constant 5.000000e-01 : f32
    %171 = vector.broadcast %cst_65 : f32 to vector<8x32xf32>
    %172 = arith.addf %170, %171 : vector<8x32xf32>
    %173 = vector.extract_strided_slice %164 {offsets = [0, 32], sizes = [8, 32], strides = [1, 1]} : vector<8x128xf32> to vector<8x32xf32>
    %cst_66 = arith.constant 5.000000e-01 : f32
    %174 = vector.broadcast %cst_66 : f32 to vector<8x32xf32>
    %175 = arith.mulf %174, %173 : vector<8x32xf32>
    %176 = math.tanh %175 : vector<8x32xf32>
    %cst_67 = arith.constant 5.000000e-01 : f32
    %177 = vector.broadcast %cst_67 : f32 to vector<8x32xf32>
    %178 = arith.mulf %177, %176 : vector<8x32xf32>
    %cst_68 = arith.constant 5.000000e-01 : f32
    %179 = vector.broadcast %cst_68 : f32 to vector<8x32xf32>
    %180 = arith.addf %178, %179 : vector<8x32xf32>
    %181 = vector.extract_strided_slice %164 {offsets = [0, 64], sizes = [8, 32], strides = [1, 1]} : vector<8x128xf32> to vector<8x32xf32>
    %182 = math.tanh %181 : vector<8x32xf32>
    %183 = vector.extract_strided_slice %164 {offsets = [0, 96], sizes = [8, 32], strides = [1, 1]} : vector<8x128xf32> to vector<8x32xf32>
    %cst_69 = arith.constant 5.000000e-01 : f32
    %184 = vector.broadcast %cst_69 : f32 to vector<8x32xf32>
    %185 = arith.mulf %184, %183 : vector<8x32xf32>
    %186 = math.tanh %185 : vector<8x32xf32>
    %cst_70 = arith.constant 5.000000e-01 : f32
    %187 = vector.broadcast %cst_70 : f32 to vector<8x32xf32>
    %188 = arith.mulf %187, %186 : vector<8x32xf32>
    %cst_71 = arith.constant 5.000000e-01 : f32
    %189 = vector.broadcast %cst_71 : f32 to vector<8x32xf32>
    %190 = arith.addf %188, %189 : vector<8x32xf32>
    %191 = arith.mulf %180, %118 : vector<8x32xf32>
    %192 = arith.mulf %172, %182 : vector<8x32xf32>
    %193 = arith.addf %191, %192 : vector<8x32xf32>
    %194 = math.tanh %193 : vector<8x32xf32>
    %195 = arith.mulf %190, %194 : vector<8x32xf32>
    %cst_72 = arith.constant dense<0.000000e+00> : vector<8x128xf32>
    %196 = tpu.matmul %195, %3, %cst_72 {dimension_numbers = #tpu.dot_dimension_numbers<[1], [0], [0], [1], [0, 0, 1, 1], [], []>} : vector<8x32xf32>, vector<32x128xf32>, vector<8x128xf32> -> vector<8x128xf32>
    %cst_73 = arith.constant dense<0.000000e+00> : vector<8x128xf32>
    %197 = tpu.matmul %156, %4, %cst_73 {dimension_numbers = #tpu.dot_dimension_numbers<[1], [0], [0], [1], [0, 0, 1, 1], [], []>} : vector<8x32xf32>, vector<32x128xf32>, vector<8x128xf32> -> vector<8x128xf32>
    %198 = arith.addf %196, %197 : vector<8x128xf32>
    %199 = vector.broadcast %5 : vector<1x128xf32> to vector<8x128xf32>
    %200 = arith.addf %198, %199 : vector<8x128xf32>
    %201 = vector.extract_strided_slice %200 {offsets = [0, 0], sizes = [8, 32], strides = [1, 1]} : vector<8x128xf32> to vector<8x32xf32>
    %cst_74 = arith.constant 5.000000e-01 : f32
    %202 = vector.broadcast %cst_74 : f32 to vector<8x32xf32>
    %203 = arith.mulf %202, %201 : vector<8x32xf32>
    %204 = math.tanh %203 : vector<8x32xf32>
    %cst_75 = arith.constant 5.000000e-01 : f32
    %205 = vector.broadcast %cst_75 : f32 to vector<8x32xf32>
    %206 = arith.mulf %205, %204 : vector<8x32xf32>
    %cst_76 = arith.constant 5.000000e-01 : f32
    %207 = vector.broadcast %cst_76 : f32 to vector<8x32xf32>
    %208 = arith.addf %206, %207 : vector<8x32xf32>
    %209 = vector.extract_strided_slice %200 {offsets = [0, 32], sizes = [8, 32], strides = [1, 1]} : vector<8x128xf32> to vector<8x32xf32>
    %cst_77 = arith.constant 5.000000e-01 : f32
    %210 = vector.broadcast %cst_77 : f32 to vector<8x32xf32>
    %211 = arith.mulf %210, %209 : vector<8x32xf32>
    %212 = math.tanh %211 : vector<8x32xf32>
    %cst_78 = arith.constant 5.000000e-01 : f32
    %213 = vector.broadcast %cst_78 : f32 to vector<8x32xf32>
    %214 = arith.mulf %213, %212 : vector<8x32xf32>
    %cst_79 = arith.constant 5.000000e-01 : f32
    %215 = vector.broadcast %cst_79 : f32 to vector<8x32xf32>
    %216 = arith.addf %214, %215 : vector<8x32xf32>
    %217 = vector.extract_strided_slice %200 {offsets = [0, 64], sizes = [8, 32], strides = [1, 1]} : vector<8x128xf32> to vector<8x32xf32>
    %218 = math.tanh %217 : vector<8x32xf32>
    %219 = vector.extract_strided_slice %200 {offsets = [0, 96], sizes = [8, 32], strides = [1, 1]} : vector<8x128xf32> to vector<8x32xf32>
    %cst_80 = arith.constant 5.000000e-01 : f32
    %220 = vector.broadcast %cst_80 : f32 to vector<8x32xf32>
    %221 = arith.mulf %220, %219 : vector<8x32xf32>
    %222 = math.tanh %221 : vector<8x32xf32>
    %cst_81 = arith.constant 5.000000e-01 : f32
    %223 = vector.broadcast %cst_81 : f32 to vector<8x32xf32>
    %224 = arith.mulf %223, %222 : vector<8x32xf32>
    %cst_82 = arith.constant 5.000000e-01 : f32
    %225 = vector.broadcast %cst_82 : f32 to vector<8x32xf32>
    %226 = arith.addf %224, %225 : vector<8x32xf32>
    %227 = arith.mulf %216, %154 : vector<8x32xf32>
    %228 = arith.mulf %208, %218 : vector<8x32xf32>
    %229 = arith.addf %227, %228 : vector<8x32xf32>
    %230 = math.tanh %229 : vector<8x32xf32>
    %231 = arith.mulf %226, %230 : vector<8x32xf32>
    %c3_i32 = arith.constant 3 : i32
    %232 = arith.index_cast %c3_i32 : i32 to index
    %c0_83 = arith.constant 0 : index
    %c0_84 = arith.constant 0 : index
    %233 = vector.load %arg1[%232, %c0_83, %c0_84] : memref<8x8x16xf32, #tpu.memory_space<vmem>>, vector<1x8x16xf32>
    %234 = vector.shape_cast %233 : vector<1x8x16xf32> to vector<8x16xf32>
    %cst_85 = arith.constant dense<0.000000e+00> : vector<8x128xf32>
    %235 = tpu.matmul %234, %0, %cst_85 {dimension_numbers = #tpu.dot_dimension_numbers<[1], [0], [0], [1], [0, 0, 1, 1], [], []>} : vector<8x16xf32>, vector<16x128xf32>, vector<8x128xf32> -> vector<8x128xf32>
    %cst_86 = arith.constant dense<0.000000e+00> : vector<8x128xf32>
    %236 = tpu.matmul %195, %1, %cst_86 {dimension_numbers = #tpu.dot_dimension_numbers<[1], [0], [0], [1], [0, 0, 1, 1], [], []>} : vector<8x32xf32>, vector<32x128xf32>, vector<8x128xf32> -> vector<8x128xf32>
    %237 = arith.addf %235, %236 : vector<8x128xf32>
    %238 = vector.broadcast %2 : vector<1x128xf32> to vector<8x128xf32>
    %239 = arith.addf %237, %238 : vector<8x128xf32>
    %240 = vector.extract_strided_slice %239 {offsets = [0, 0], sizes = [8, 32], strides = [1, 1]} : vector<8x128xf32> to vector<8x32xf32>
    %cst_87 = arith.constant 5.000000e-01 : f32
    %241 = vector.broadcast %cst_87 : f32 to vector<8x32xf32>
    %242 = arith.mulf %241, %240 : vector<8x32xf32>
    %243 = math.tanh %242 : vector<8x32xf32>
    %cst_88 = arith.constant 5.000000e-01 : f32
    %244 = vector.broadcast %cst_88 : f32 to vector<8x32xf32>
    %245 = arith.mulf %244, %243 : vector<8x32xf32>
    %cst_89 = arith.constant 5.000000e-01 : f32
    %246 = vector.broadcast %cst_89 : f32 to vector<8x32xf32>
    %247 = arith.addf %245, %246 : vector<8x32xf32>
    %248 = vector.extract_strided_slice %239 {offsets = [0, 32], sizes = [8, 32], strides = [1, 1]} : vector<8x128xf32> to vector<8x32xf32>
    %cst_90 = arith.constant 5.000000e-01 : f32
    %249 = vector.broadcast %cst_90 : f32 to vector<8x32xf32>
    %250 = arith.mulf %249, %248 : vector<8x32xf32>
    %251 = math.tanh %250 : vector<8x32xf32>
    %cst_91 = arith.constant 5.000000e-01 : f32
    %252 = vector.broadcast %cst_91 : f32 to vector<8x32xf32>
    %253 = arith.mulf %252, %251 : vector<8x32xf32>
    %cst_92 = arith.constant 5.000000e-01 : f32
    %254 = vector.broadcast %cst_92 : f32 to vector<8x32xf32>
    %255 = arith.addf %253, %254 : vector<8x32xf32>
    %256 = vector.extract_strided_slice %239 {offsets = [0, 64], sizes = [8, 32], strides = [1, 1]} : vector<8x128xf32> to vector<8x32xf32>
    %257 = math.tanh %256 : vector<8x32xf32>
    %258 = vector.extract_strided_slice %239 {offsets = [0, 96], sizes = [8, 32], strides = [1, 1]} : vector<8x128xf32> to vector<8x32xf32>
    %cst_93 = arith.constant 5.000000e-01 : f32
    %259 = vector.broadcast %cst_93 : f32 to vector<8x32xf32>
    %260 = arith.mulf %259, %258 : vector<8x32xf32>
    %261 = math.tanh %260 : vector<8x32xf32>
    %cst_94 = arith.constant 5.000000e-01 : f32
    %262 = vector.broadcast %cst_94 : f32 to vector<8x32xf32>
    %263 = arith.mulf %262, %261 : vector<8x32xf32>
    %cst_95 = arith.constant 5.000000e-01 : f32
    %264 = vector.broadcast %cst_95 : f32 to vector<8x32xf32>
    %265 = arith.addf %263, %264 : vector<8x32xf32>
    %266 = arith.mulf %255, %193 : vector<8x32xf32>
    %267 = arith.mulf %247, %257 : vector<8x32xf32>
    %268 = arith.addf %266, %267 : vector<8x32xf32>
    %269 = math.tanh %268 : vector<8x32xf32>
    %270 = arith.mulf %265, %269 : vector<8x32xf32>
    %cst_96 = arith.constant dense<0.000000e+00> : vector<8x128xf32>
    %271 = tpu.matmul %270, %3, %cst_96 {dimension_numbers = #tpu.dot_dimension_numbers<[1], [0], [0], [1], [0, 0, 1, 1], [], []>} : vector<8x32xf32>, vector<32x128xf32>, vector<8x128xf32> -> vector<8x128xf32>
    %cst_97 = arith.constant dense<0.000000e+00> : vector<8x128xf32>
    %272 = tpu.matmul %231, %4, %cst_97 {dimension_numbers = #tpu.dot_dimension_numbers<[1], [0], [0], [1], [0, 0, 1, 1], [], []>} : vector<8x32xf32>, vector<32x128xf32>, vector<8x128xf32> -> vector<8x128xf32>
    %273 = arith.addf %271, %272 : vector<8x128xf32>
    %274 = vector.broadcast %5 : vector<1x128xf32> to vector<8x128xf32>
    %275 = arith.addf %273, %274 : vector<8x128xf32>
    %276 = vector.extract_strided_slice %275 {offsets = [0, 0], sizes = [8, 32], strides = [1, 1]} : vector<8x128xf32> to vector<8x32xf32>
    %cst_98 = arith.constant 5.000000e-01 : f32
    %277 = vector.broadcast %cst_98 : f32 to vector<8x32xf32>
    %278 = arith.mulf %277, %276 : vector<8x32xf32>
    %279 = math.tanh %278 : vector<8x32xf32>
    %cst_99 = arith.constant 5.000000e-01 : f32
    %280 = vector.broadcast %cst_99 : f32 to vector<8x32xf32>
    %281 = arith.mulf %280, %279 : vector<8x32xf32>
    %cst_100 = arith.constant 5.000000e-01 : f32
    %282 = vector.broadcast %cst_100 : f32 to vector<8x32xf32>
    %283 = arith.addf %281, %282 : vector<8x32xf32>
    %284 = vector.extract_strided_slice %275 {offsets = [0, 32], sizes = [8, 32], strides = [1, 1]} : vector<8x128xf32> to vector<8x32xf32>
    %cst_101 = arith.constant 5.000000e-01 : f32
    %285 = vector.broadcast %cst_101 : f32 to vector<8x32xf32>
    %286 = arith.mulf %285, %284 : vector<8x32xf32>
    %287 = math.tanh %286 : vector<8x32xf32>
    %cst_102 = arith.constant 5.000000e-01 : f32
    %288 = vector.broadcast %cst_102 : f32 to vector<8x32xf32>
    %289 = arith.mulf %288, %287 : vector<8x32xf32>
    %cst_103 = arith.constant 5.000000e-01 : f32
    %290 = vector.broadcast %cst_103 : f32 to vector<8x32xf32>
    %291 = arith.addf %289, %290 : vector<8x32xf32>
    %292 = vector.extract_strided_slice %275 {offsets = [0, 64], sizes = [8, 32], strides = [1, 1]} : vector<8x128xf32> to vector<8x32xf32>
    %293 = math.tanh %292 : vector<8x32xf32>
    %294 = vector.extract_strided_slice %275 {offsets = [0, 96], sizes = [8, 32], strides = [1, 1]} : vector<8x128xf32> to vector<8x32xf32>
    %cst_104 = arith.constant 5.000000e-01 : f32
    %295 = vector.broadcast %cst_104 : f32 to vector<8x32xf32>
    %296 = arith.mulf %295, %294 : vector<8x32xf32>
    %297 = math.tanh %296 : vector<8x32xf32>
    %cst_105 = arith.constant 5.000000e-01 : f32
    %298 = vector.broadcast %cst_105 : f32 to vector<8x32xf32>
    %299 = arith.mulf %298, %297 : vector<8x32xf32>
    %cst_106 = arith.constant 5.000000e-01 : f32
    %300 = vector.broadcast %cst_106 : f32 to vector<8x32xf32>
    %301 = arith.addf %299, %300 : vector<8x32xf32>
    %302 = arith.mulf %291, %229 : vector<8x32xf32>
    %303 = arith.mulf %283, %293 : vector<8x32xf32>
    %304 = arith.addf %302, %303 : vector<8x32xf32>
    %305 = math.tanh %304 : vector<8x32xf32>
    %306 = arith.mulf %301, %305 : vector<8x32xf32>
    %c4_i32 = arith.constant 4 : i32
    %307 = arith.index_cast %c4_i32 : i32 to index
    %c0_107 = arith.constant 0 : index
    %c0_108 = arith.constant 0 : index
    %308 = vector.load %arg1[%307, %c0_107, %c0_108] : memref<8x8x16xf32, #tpu.memory_space<vmem>>, vector<1x8x16xf32>
    %309 = vector.shape_cast %308 : vector<1x8x16xf32> to vector<8x16xf32>
    %cst_109 = arith.constant dense<0.000000e+00> : vector<8x128xf32>
    %310 = tpu.matmul %309, %0, %cst_109 {dimension_numbers = #tpu.dot_dimension_numbers<[1], [0], [0], [1], [0, 0, 1, 1], [], []>} : vector<8x16xf32>, vector<16x128xf32>, vector<8x128xf32> -> vector<8x128xf32>
    %cst_110 = arith.constant dense<0.000000e+00> : vector<8x128xf32>
    %311 = tpu.matmul %270, %1, %cst_110 {dimension_numbers = #tpu.dot_dimension_numbers<[1], [0], [0], [1], [0, 0, 1, 1], [], []>} : vector<8x32xf32>, vector<32x128xf32>, vector<8x128xf32> -> vector<8x128xf32>
    %312 = arith.addf %310, %311 : vector<8x128xf32>
    %313 = vector.broadcast %2 : vector<1x128xf32> to vector<8x128xf32>
    %314 = arith.addf %312, %313 : vector<8x128xf32>
    %315 = vector.extract_strided_slice %314 {offsets = [0, 0], sizes = [8, 32], strides = [1, 1]} : vector<8x128xf32> to vector<8x32xf32>
    %cst_111 = arith.constant 5.000000e-01 : f32
    %316 = vector.broadcast %cst_111 : f32 to vector<8x32xf32>
    %317 = arith.mulf %316, %315 : vector<8x32xf32>
    %318 = math.tanh %317 : vector<8x32xf32>
    %cst_112 = arith.constant 5.000000e-01 : f32
    %319 = vector.broadcast %cst_112 : f32 to vector<8x32xf32>
    %320 = arith.mulf %319, %318 : vector<8x32xf32>
    %cst_113 = arith.constant 5.000000e-01 : f32
    %321 = vector.broadcast %cst_113 : f32 to vector<8x32xf32>
    %322 = arith.addf %320, %321 : vector<8x32xf32>
    %323 = vector.extract_strided_slice %314 {offsets = [0, 32], sizes = [8, 32], strides = [1, 1]} : vector<8x128xf32> to vector<8x32xf32>
    %cst_114 = arith.constant 5.000000e-01 : f32
    %324 = vector.broadcast %cst_114 : f32 to vector<8x32xf32>
    %325 = arith.mulf %324, %323 : vector<8x32xf32>
    %326 = math.tanh %325 : vector<8x32xf32>
    %cst_115 = arith.constant 5.000000e-01 : f32
    %327 = vector.broadcast %cst_115 : f32 to vector<8x32xf32>
    %328 = arith.mulf %327, %326 : vector<8x32xf32>
    %cst_116 = arith.constant 5.000000e-01 : f32
    %329 = vector.broadcast %cst_116 : f32 to vector<8x32xf32>
    %330 = arith.addf %328, %329 : vector<8x32xf32>
    %331 = vector.extract_strided_slice %314 {offsets = [0, 64], sizes = [8, 32], strides = [1, 1]} : vector<8x128xf32> to vector<8x32xf32>
    %332 = math.tanh %331 : vector<8x32xf32>
    %333 = vector.extract_strided_slice %314 {offsets = [0, 96], sizes = [8, 32], strides = [1, 1]} : vector<8x128xf32> to vector<8x32xf32>
    %cst_117 = arith.constant 5.000000e-01 : f32
    %334 = vector.broadcast %cst_117 : f32 to vector<8x32xf32>
    %335 = arith.mulf %334, %333 : vector<8x32xf32>
    %336 = math.tanh %335 : vector<8x32xf32>
    %cst_118 = arith.constant 5.000000e-01 : f32
    %337 = vector.broadcast %cst_118 : f32 to vector<8x32xf32>
    %338 = arith.mulf %337, %336 : vector<8x32xf32>
    %cst_119 = arith.constant 5.000000e-01 : f32
    %339 = vector.broadcast %cst_119 : f32 to vector<8x32xf32>
    %340 = arith.addf %338, %339 : vector<8x32xf32>
    %341 = arith.mulf %330, %268 : vector<8x32xf32>
    %342 = arith.mulf %322, %332 : vector<8x32xf32>
    %343 = arith.addf %341, %342 : vector<8x32xf32>
    %344 = math.tanh %343 : vector<8x32xf32>
    %345 = arith.mulf %340, %344 : vector<8x32xf32>
    %cst_120 = arith.constant dense<0.000000e+00> : vector<8x128xf32>
    %346 = tpu.matmul %345, %3, %cst_120 {dimension_numbers = #tpu.dot_dimension_numbers<[1], [0], [0], [1], [0, 0, 1, 1], [], []>} : vector<8x32xf32>, vector<32x128xf32>, vector<8x128xf32> -> vector<8x128xf32>
    %cst_121 = arith.constant dense<0.000000e+00> : vector<8x128xf32>
    %347 = tpu.matmul %306, %4, %cst_121 {dimension_numbers = #tpu.dot_dimension_numbers<[1], [0], [0], [1], [0, 0, 1, 1], [], []>} : vector<8x32xf32>, vector<32x128xf32>, vector<8x128xf32> -> vector<8x128xf32>
    %348 = arith.addf %346, %347 : vector<8x128xf32>
    %349 = vector.broadcast %5 : vector<1x128xf32> to vector<8x128xf32>
    %350 = arith.addf %348, %349 : vector<8x128xf32>
    %351 = vector.extract_strided_slice %350 {offsets = [0, 0], sizes = [8, 32], strides = [1, 1]} : vector<8x128xf32> to vector<8x32xf32>
    %cst_122 = arith.constant 5.000000e-01 : f32
    %352 = vector.broadcast %cst_122 : f32 to vector<8x32xf32>
    %353 = arith.mulf %352, %351 : vector<8x32xf32>
    %354 = math.tanh %353 : vector<8x32xf32>
    %cst_123 = arith.constant 5.000000e-01 : f32
    %355 = vector.broadcast %cst_123 : f32 to vector<8x32xf32>
    %356 = arith.mulf %355, %354 : vector<8x32xf32>
    %cst_124 = arith.constant 5.000000e-01 : f32
    %357 = vector.broadcast %cst_124 : f32 to vector<8x32xf32>
    %358 = arith.addf %356, %357 : vector<8x32xf32>
    %359 = vector.extract_strided_slice %350 {offsets = [0, 32], sizes = [8, 32], strides = [1, 1]} : vector<8x128xf32> to vector<8x32xf32>
    %cst_125 = arith.constant 5.000000e-01 : f32
    %360 = vector.broadcast %cst_125 : f32 to vector<8x32xf32>
    %361 = arith.mulf %360, %359 : vector<8x32xf32>
    %362 = math.tanh %361 : vector<8x32xf32>
    %cst_126 = arith.constant 5.000000e-01 : f32
    %363 = vector.broadcast %cst_126 : f32 to vector<8x32xf32>
    %364 = arith.mulf %363, %362 : vector<8x32xf32>
    %cst_127 = arith.constant 5.000000e-01 : f32
    %365 = vector.broadcast %cst_127 : f32 to vector<8x32xf32>
    %366 = arith.addf %364, %365 : vector<8x32xf32>
    %367 = vector.extract_strided_slice %350 {offsets = [0, 64], sizes = [8, 32], strides = [1, 1]} : vector<8x128xf32> to vector<8x32xf32>
    %368 = math.tanh %367 : vector<8x32xf32>
    %369 = vector.extract_strided_slice %350 {offsets = [0, 96], sizes = [8, 32], strides = [1, 1]} : vector<8x128xf32> to vector<8x32xf32>
    %cst_128 = arith.constant 5.000000e-01 : f32
    %370 = vector.broadcast %cst_128 : f32 to vector<8x32xf32>
    %371 = arith.mulf %370, %369 : vector<8x32xf32>
    %372 = math.tanh %371 : vector<8x32xf32>
    %cst_129 = arith.constant 5.000000e-01 : f32
    %373 = vector.broadcast %cst_129 : f32 to vector<8x32xf32>
    %374 = arith.mulf %373, %372 : vector<8x32xf32>
    %cst_130 = arith.constant 5.000000e-01 : f32
    %375 = vector.broadcast %cst_130 : f32 to vector<8x32xf32>
    %376 = arith.addf %374, %375 : vector<8x32xf32>
    %377 = arith.mulf %366, %304 : vector<8x32xf32>
    %378 = arith.mulf %358, %368 : vector<8x32xf32>
    %379 = arith.addf %377, %378 : vector<8x32xf32>
    %380 = math.tanh %379 : vector<8x32xf32>
    %381 = arith.mulf %376, %380 : vector<8x32xf32>
    %c5_i32 = arith.constant 5 : i32
    %382 = arith.index_cast %c5_i32 : i32 to index
    %c0_131 = arith.constant 0 : index
    %c0_132 = arith.constant 0 : index
    %383 = vector.load %arg1[%382, %c0_131, %c0_132] : memref<8x8x16xf32, #tpu.memory_space<vmem>>, vector<1x8x16xf32>
    %384 = vector.shape_cast %383 : vector<1x8x16xf32> to vector<8x16xf32>
    %cst_133 = arith.constant dense<0.000000e+00> : vector<8x128xf32>
    %385 = tpu.matmul %384, %0, %cst_133 {dimension_numbers = #tpu.dot_dimension_numbers<[1], [0], [0], [1], [0, 0, 1, 1], [], []>} : vector<8x16xf32>, vector<16x128xf32>, vector<8x128xf32> -> vector<8x128xf32>
    %cst_134 = arith.constant dense<0.000000e+00> : vector<8x128xf32>
    %386 = tpu.matmul %345, %1, %cst_134 {dimension_numbers = #tpu.dot_dimension_numbers<[1], [0], [0], [1], [0, 0, 1, 1], [], []>} : vector<8x32xf32>, vector<32x128xf32>, vector<8x128xf32> -> vector<8x128xf32>
    %387 = arith.addf %385, %386 : vector<8x128xf32>
    %388 = vector.broadcast %2 : vector<1x128xf32> to vector<8x128xf32>
    %389 = arith.addf %387, %388 : vector<8x128xf32>
    %390 = vector.extract_strided_slice %389 {offsets = [0, 0], sizes = [8, 32], strides = [1, 1]} : vector<8x128xf32> to vector<8x32xf32>
    %cst_135 = arith.constant 5.000000e-01 : f32
    %391 = vector.broadcast %cst_135 : f32 to vector<8x32xf32>
    %392 = arith.mulf %391, %390 : vector<8x32xf32>
    %393 = math.tanh %392 : vector<8x32xf32>
    %cst_136 = arith.constant 5.000000e-01 : f32
    %394 = vector.broadcast %cst_136 : f32 to vector<8x32xf32>
    %395 = arith.mulf %394, %393 : vector<8x32xf32>
    %cst_137 = arith.constant 5.000000e-01 : f32
    %396 = vector.broadcast %cst_137 : f32 to vector<8x32xf32>
    %397 = arith.addf %395, %396 : vector<8x32xf32>
    %398 = vector.extract_strided_slice %389 {offsets = [0, 32], sizes = [8, 32], strides = [1, 1]} : vector<8x128xf32> to vector<8x32xf32>
    %cst_138 = arith.constant 5.000000e-01 : f32
    %399 = vector.broadcast %cst_138 : f32 to vector<8x32xf32>
    %400 = arith.mulf %399, %398 : vector<8x32xf32>
    %401 = math.tanh %400 : vector<8x32xf32>
    %cst_139 = arith.constant 5.000000e-01 : f32
    %402 = vector.broadcast %cst_139 : f32 to vector<8x32xf32>
    %403 = arith.mulf %402, %401 : vector<8x32xf32>
    %cst_140 = arith.constant 5.000000e-01 : f32
    %404 = vector.broadcast %cst_140 : f32 to vector<8x32xf32>
    %405 = arith.addf %403, %404 : vector<8x32xf32>
    %406 = vector.extract_strided_slice %389 {offsets = [0, 64], sizes = [8, 32], strides = [1, 1]} : vector<8x128xf32> to vector<8x32xf32>
    %407 = math.tanh %406 : vector<8x32xf32>
    %408 = vector.extract_strided_slice %389 {offsets = [0, 96], sizes = [8, 32], strides = [1, 1]} : vector<8x128xf32> to vector<8x32xf32>
    %cst_141 = arith.constant 5.000000e-01 : f32
    %409 = vector.broadcast %cst_141 : f32 to vector<8x32xf32>
    %410 = arith.mulf %409, %408 : vector<8x32xf32>
    %411 = math.tanh %410 : vector<8x32xf32>
    %cst_142 = arith.constant 5.000000e-01 : f32
    %412 = vector.broadcast %cst_142 : f32 to vector<8x32xf32>
    %413 = arith.mulf %412, %411 : vector<8x32xf32>
    %cst_143 = arith.constant 5.000000e-01 : f32
    %414 = vector.broadcast %cst_143 : f32 to vector<8x32xf32>
    %415 = arith.addf %413, %414 : vector<8x32xf32>
    %416 = arith.mulf %405, %343 : vector<8x32xf32>
    %417 = arith.mulf %397, %407 : vector<8x32xf32>
    %418 = arith.addf %416, %417 : vector<8x32xf32>
    %419 = math.tanh %418 : vector<8x32xf32>
    %420 = arith.mulf %415, %419 : vector<8x32xf32>
    %cst_144 = arith.constant dense<0.000000e+00> : vector<8x128xf32>
    %421 = tpu.matmul %420, %3, %cst_144 {dimension_numbers = #tpu.dot_dimension_numbers<[1], [0], [0], [1], [0, 0, 1, 1], [], []>} : vector<8x32xf32>, vector<32x128xf32>, vector<8x128xf32> -> vector<8x128xf32>
    %cst_145 = arith.constant dense<0.000000e+00> : vector<8x128xf32>
    %422 = tpu.matmul %381, %4, %cst_145 {dimension_numbers = #tpu.dot_dimension_numbers<[1], [0], [0], [1], [0, 0, 1, 1], [], []>} : vector<8x32xf32>, vector<32x128xf32>, vector<8x128xf32> -> vector<8x128xf32>
    %423 = arith.addf %421, %422 : vector<8x128xf32>
    %424 = vector.broadcast %5 : vector<1x128xf32> to vector<8x128xf32>
    %425 = arith.addf %423, %424 : vector<8x128xf32>
    %426 = vector.extract_strided_slice %425 {offsets = [0, 0], sizes = [8, 32], strides = [1, 1]} : vector<8x128xf32> to vector<8x32xf32>
    %cst_146 = arith.constant 5.000000e-01 : f32
    %427 = vector.broadcast %cst_146 : f32 to vector<8x32xf32>
    %428 = arith.mulf %427, %426 : vector<8x32xf32>
    %429 = math.tanh %428 : vector<8x32xf32>
    %cst_147 = arith.constant 5.000000e-01 : f32
    %430 = vector.broadcast %cst_147 : f32 to vector<8x32xf32>
    %431 = arith.mulf %430, %429 : vector<8x32xf32>
    %cst_148 = arith.constant 5.000000e-01 : f32
    %432 = vector.broadcast %cst_148 : f32 to vector<8x32xf32>
    %433 = arith.addf %431, %432 : vector<8x32xf32>
    %434 = vector.extract_strided_slice %425 {offsets = [0, 32], sizes = [8, 32], strides = [1, 1]} : vector<8x128xf32> to vector<8x32xf32>
    %cst_149 = arith.constant 5.000000e-01 : f32
    %435 = vector.broadcast %cst_149 : f32 to vector<8x32xf32>
    %436 = arith.mulf %435, %434 : vector<8x32xf32>
    %437 = math.tanh %436 : vector<8x32xf32>
    %cst_150 = arith.constant 5.000000e-01 : f32
    %438 = vector.broadcast %cst_150 : f32 to vector<8x32xf32>
    %439 = arith.mulf %438, %437 : vector<8x32xf32>
    %cst_151 = arith.constant 5.000000e-01 : f32
    %440 = vector.broadcast %cst_151 : f32 to vector<8x32xf32>
    %441 = arith.addf %439, %440 : vector<8x32xf32>
    %442 = vector.extract_strided_slice %425 {offsets = [0, 64], sizes = [8, 32], strides = [1, 1]} : vector<8x128xf32> to vector<8x32xf32>
    %443 = math.tanh %442 : vector<8x32xf32>
    %444 = vector.extract_strided_slice %425 {offsets = [0, 96], sizes = [8, 32], strides = [1, 1]} : vector<8x128xf32> to vector<8x32xf32>
    %cst_152 = arith.constant 5.000000e-01 : f32
    %445 = vector.broadcast %cst_152 : f32 to vector<8x32xf32>
    %446 = arith.mulf %445, %444 : vector<8x32xf32>
    %447 = math.tanh %446 : vector<8x32xf32>
    %cst_153 = arith.constant 5.000000e-01 : f32
    %448 = vector.broadcast %cst_153 : f32 to vector<8x32xf32>
    %449 = arith.mulf %448, %447 : vector<8x32xf32>
    %cst_154 = arith.constant 5.000000e-01 : f32
    %450 = vector.broadcast %cst_154 : f32 to vector<8x32xf32>
    %451 = arith.addf %449, %450 : vector<8x32xf32>
    %452 = arith.mulf %441, %379 : vector<8x32xf32>
    %453 = arith.mulf %433, %443 : vector<8x32xf32>
    %454 = arith.addf %452, %453 : vector<8x32xf32>
    %455 = math.tanh %454 : vector<8x32xf32>
    %456 = arith.mulf %451, %455 : vector<8x32xf32>
    %c6_i32 = arith.constant 6 : i32
    %457 = arith.index_cast %c6_i32 : i32 to index
    %c0_155 = arith.constant 0 : index
    %c0_156 = arith.constant 0 : index
    %458 = vector.load %arg1[%457, %c0_155, %c0_156] : memref<8x8x16xf32, #tpu.memory_space<vmem>>, vector<1x8x16xf32>
    %459 = vector.shape_cast %458 : vector<1x8x16xf32> to vector<8x16xf32>
    %cst_157 = arith.constant dense<0.000000e+00> : vector<8x128xf32>
    %460 = tpu.matmul %459, %0, %cst_157 {dimension_numbers = #tpu.dot_dimension_numbers<[1], [0], [0], [1], [0, 0, 1, 1], [], []>} : vector<8x16xf32>, vector<16x128xf32>, vector<8x128xf32> -> vector<8x128xf32>
    %cst_158 = arith.constant dense<0.000000e+00> : vector<8x128xf32>
    %461 = tpu.matmul %420, %1, %cst_158 {dimension_numbers = #tpu.dot_dimension_numbers<[1], [0], [0], [1], [0, 0, 1, 1], [], []>} : vector<8x32xf32>, vector<32x128xf32>, vector<8x128xf32> -> vector<8x128xf32>
    %462 = arith.addf %460, %461 : vector<8x128xf32>
    %463 = vector.broadcast %2 : vector<1x128xf32> to vector<8x128xf32>
    %464 = arith.addf %462, %463 : vector<8x128xf32>
    %465 = vector.extract_strided_slice %464 {offsets = [0, 0], sizes = [8, 32], strides = [1, 1]} : vector<8x128xf32> to vector<8x32xf32>
    %cst_159 = arith.constant 5.000000e-01 : f32
    %466 = vector.broadcast %cst_159 : f32 to vector<8x32xf32>
    %467 = arith.mulf %466, %465 : vector<8x32xf32>
    %468 = math.tanh %467 : vector<8x32xf32>
    %cst_160 = arith.constant 5.000000e-01 : f32
    %469 = vector.broadcast %cst_160 : f32 to vector<8x32xf32>
    %470 = arith.mulf %469, %468 : vector<8x32xf32>
    %cst_161 = arith.constant 5.000000e-01 : f32
    %471 = vector.broadcast %cst_161 : f32 to vector<8x32xf32>
    %472 = arith.addf %470, %471 : vector<8x32xf32>
    %473 = vector.extract_strided_slice %464 {offsets = [0, 32], sizes = [8, 32], strides = [1, 1]} : vector<8x128xf32> to vector<8x32xf32>
    %cst_162 = arith.constant 5.000000e-01 : f32
    %474 = vector.broadcast %cst_162 : f32 to vector<8x32xf32>
    %475 = arith.mulf %474, %473 : vector<8x32xf32>
    %476 = math.tanh %475 : vector<8x32xf32>
    %cst_163 = arith.constant 5.000000e-01 : f32
    %477 = vector.broadcast %cst_163 : f32 to vector<8x32xf32>
    %478 = arith.mulf %477, %476 : vector<8x32xf32>
    %cst_164 = arith.constant 5.000000e-01 : f32
    %479 = vector.broadcast %cst_164 : f32 to vector<8x32xf32>
    %480 = arith.addf %478, %479 : vector<8x32xf32>
    %481 = vector.extract_strided_slice %464 {offsets = [0, 64], sizes = [8, 32], strides = [1, 1]} : vector<8x128xf32> to vector<8x32xf32>
    %482 = math.tanh %481 : vector<8x32xf32>
    %483 = vector.extract_strided_slice %464 {offsets = [0, 96], sizes = [8, 32], strides = [1, 1]} : vector<8x128xf32> to vector<8x32xf32>
    %cst_165 = arith.constant 5.000000e-01 : f32
    %484 = vector.broadcast %cst_165 : f32 to vector<8x32xf32>
    %485 = arith.mulf %484, %483 : vector<8x32xf32>
    %486 = math.tanh %485 : vector<8x32xf32>
    %cst_166 = arith.constant 5.000000e-01 : f32
    %487 = vector.broadcast %cst_166 : f32 to vector<8x32xf32>
    %488 = arith.mulf %487, %486 : vector<8x32xf32>
    %cst_167 = arith.constant 5.000000e-01 : f32
    %489 = vector.broadcast %cst_167 : f32 to vector<8x32xf32>
    %490 = arith.addf %488, %489 : vector<8x32xf32>
    %491 = arith.mulf %480, %418 : vector<8x32xf32>
    %492 = arith.mulf %472, %482 : vector<8x32xf32>
    %493 = arith.addf %491, %492 : vector<8x32xf32>
    %494 = math.tanh %493 : vector<8x32xf32>
    %495 = arith.mulf %490, %494 : vector<8x32xf32>
    %cst_168 = arith.constant dense<0.000000e+00> : vector<8x128xf32>
    %496 = tpu.matmul %495, %3, %cst_168 {dimension_numbers = #tpu.dot_dimension_numbers<[1], [0], [0], [1], [0, 0, 1, 1], [], []>} : vector<8x32xf32>, vector<32x128xf32>, vector<8x128xf32> -> vector<8x128xf32>
    %cst_169 = arith.constant dense<0.000000e+00> : vector<8x128xf32>
    %497 = tpu.matmul %456, %4, %cst_169 {dimension_numbers = #tpu.dot_dimension_numbers<[1], [0], [0], [1], [0, 0, 1, 1], [], []>} : vector<8x32xf32>, vector<32x128xf32>, vector<8x128xf32> -> vector<8x128xf32>
    %498 = arith.addf %496, %497 : vector<8x128xf32>
    %499 = vector.broadcast %5 : vector<1x128xf32> to vector<8x128xf32>
    %500 = arith.addf %498, %499 : vector<8x128xf32>
    %501 = vector.extract_strided_slice %500 {offsets = [0, 0], sizes = [8, 32], strides = [1, 1]} : vector<8x128xf32> to vector<8x32xf32>
    %cst_170 = arith.constant 5.000000e-01 : f32
    %502 = vector.broadcast %cst_170 : f32 to vector<8x32xf32>
    %503 = arith.mulf %502, %501 : vector<8x32xf32>
    %504 = math.tanh %503 : vector<8x32xf32>
    %cst_171 = arith.constant 5.000000e-01 : f32
    %505 = vector.broadcast %cst_171 : f32 to vector<8x32xf32>
    %506 = arith.mulf %505, %504 : vector<8x32xf32>
    %cst_172 = arith.constant 5.000000e-01 : f32
    %507 = vector.broadcast %cst_172 : f32 to vector<8x32xf32>
    %508 = arith.addf %506, %507 : vector<8x32xf32>
    %509 = vector.extract_strided_slice %500 {offsets = [0, 32], sizes = [8, 32], strides = [1, 1]} : vector<8x128xf32> to vector<8x32xf32>
    %cst_173 = arith.constant 5.000000e-01 : f32
    %510 = vector.broadcast %cst_173 : f32 to vector<8x32xf32>
    %511 = arith.mulf %510, %509 : vector<8x32xf32>
    %512 = math.tanh %511 : vector<8x32xf32>
    %cst_174 = arith.constant 5.000000e-01 : f32
    %513 = vector.broadcast %cst_174 : f32 to vector<8x32xf32>
    %514 = arith.mulf %513, %512 : vector<8x32xf32>
    %cst_175 = arith.constant 5.000000e-01 : f32
    %515 = vector.broadcast %cst_175 : f32 to vector<8x32xf32>
    %516 = arith.addf %514, %515 : vector<8x32xf32>
    %517 = vector.extract_strided_slice %500 {offsets = [0, 64], sizes = [8, 32], strides = [1, 1]} : vector<8x128xf32> to vector<8x32xf32>
    %518 = math.tanh %517 : vector<8x32xf32>
    %519 = vector.extract_strided_slice %500 {offsets = [0, 96], sizes = [8, 32], strides = [1, 1]} : vector<8x128xf32> to vector<8x32xf32>
    %cst_176 = arith.constant 5.000000e-01 : f32
    %520 = vector.broadcast %cst_176 : f32 to vector<8x32xf32>
    %521 = arith.mulf %520, %519 : vector<8x32xf32>
    %522 = math.tanh %521 : vector<8x32xf32>
    %cst_177 = arith.constant 5.000000e-01 : f32
    %523 = vector.broadcast %cst_177 : f32 to vector<8x32xf32>
    %524 = arith.mulf %523, %522 : vector<8x32xf32>
    %cst_178 = arith.constant 5.000000e-01 : f32
    %525 = vector.broadcast %cst_178 : f32 to vector<8x32xf32>
    %526 = arith.addf %524, %525 : vector<8x32xf32>
    %527 = arith.mulf %516, %454 : vector<8x32xf32>
    %528 = arith.mulf %508, %518 : vector<8x32xf32>
    %529 = arith.addf %527, %528 : vector<8x32xf32>
    %530 = math.tanh %529 : vector<8x32xf32>
    %531 = arith.mulf %526, %530 : vector<8x32xf32>
    %c7_i32 = arith.constant 7 : i32
    %532 = arith.index_cast %c7_i32 : i32 to index
    %c0_179 = arith.constant 0 : index
    %c0_180 = arith.constant 0 : index
    %533 = vector.load %arg1[%532, %c0_179, %c0_180] : memref<8x8x16xf32, #tpu.memory_space<vmem>>, vector<1x8x16xf32>
    %534 = vector.shape_cast %533 : vector<1x8x16xf32> to vector<8x16xf32>
    %cst_181 = arith.constant dense<0.000000e+00> : vector<8x128xf32>
    %535 = tpu.matmul %534, %0, %cst_181 {dimension_numbers = #tpu.dot_dimension_numbers<[1], [0], [0], [1], [0, 0, 1, 1], [], []>} : vector<8x16xf32>, vector<16x128xf32>, vector<8x128xf32> -> vector<8x128xf32>
    %cst_182 = arith.constant dense<0.000000e+00> : vector<8x128xf32>
    %536 = tpu.matmul %495, %1, %cst_182 {dimension_numbers = #tpu.dot_dimension_numbers<[1], [0], [0], [1], [0, 0, 1, 1], [], []>} : vector<8x32xf32>, vector<32x128xf32>, vector<8x128xf32> -> vector<8x128xf32>
    %537 = arith.addf %535, %536 : vector<8x128xf32>
    %538 = vector.broadcast %2 : vector<1x128xf32> to vector<8x128xf32>
    %539 = arith.addf %537, %538 : vector<8x128xf32>
    %540 = vector.extract_strided_slice %539 {offsets = [0, 0], sizes = [8, 32], strides = [1, 1]} : vector<8x128xf32> to vector<8x32xf32>
    %cst_183 = arith.constant 5.000000e-01 : f32
    %541 = vector.broadcast %cst_183 : f32 to vector<8x32xf32>
    %542 = arith.mulf %541, %540 : vector<8x32xf32>
    %543 = math.tanh %542 : vector<8x32xf32>
    %cst_184 = arith.constant 5.000000e-01 : f32
    %544 = vector.broadcast %cst_184 : f32 to vector<8x32xf32>
    %545 = arith.mulf %544, %543 : vector<8x32xf32>
    %cst_185 = arith.constant 5.000000e-01 : f32
    %546 = vector.broadcast %cst_185 : f32 to vector<8x32xf32>
    %547 = arith.addf %545, %546 : vector<8x32xf32>
    %548 = vector.extract_strided_slice %539 {offsets = [0, 32], sizes = [8, 32], strides = [1, 1]} : vector<8x128xf32> to vector<8x32xf32>
    %cst_186 = arith.constant 5.000000e-01 : f32
    %549 = vector.broadcast %cst_186 : f32 to vector<8x32xf32>
    %550 = arith.mulf %549, %548 : vector<8x32xf32>
    %551 = math.tanh %550 : vector<8x32xf32>
    %cst_187 = arith.constant 5.000000e-01 : f32
    %552 = vector.broadcast %cst_187 : f32 to vector<8x32xf32>
    %553 = arith.mulf %552, %551 : vector<8x32xf32>
    %cst_188 = arith.constant 5.000000e-01 : f32
    %554 = vector.broadcast %cst_188 : f32 to vector<8x32xf32>
    %555 = arith.addf %553, %554 : vector<8x32xf32>
    %556 = vector.extract_strided_slice %539 {offsets = [0, 64], sizes = [8, 32], strides = [1, 1]} : vector<8x128xf32> to vector<8x32xf32>
    %557 = math.tanh %556 : vector<8x32xf32>
    %558 = vector.extract_strided_slice %539 {offsets = [0, 96], sizes = [8, 32], strides = [1, 1]} : vector<8x128xf32> to vector<8x32xf32>
    %cst_189 = arith.constant 5.000000e-01 : f32
    %559 = vector.broadcast %cst_189 : f32 to vector<8x32xf32>
    %560 = arith.mulf %559, %558 : vector<8x32xf32>
    %561 = math.tanh %560 : vector<8x32xf32>
    %cst_190 = arith.constant 5.000000e-01 : f32
    %562 = vector.broadcast %cst_190 : f32 to vector<8x32xf32>
    %563 = arith.mulf %562, %561 : vector<8x32xf32>
    %cst_191 = arith.constant 5.000000e-01 : f32
    %564 = vector.broadcast %cst_191 : f32 to vector<8x32xf32>
    %565 = arith.addf %563, %564 : vector<8x32xf32>
    %566 = arith.mulf %555, %493 : vector<8x32xf32>
    %567 = arith.mulf %547, %557 : vector<8x32xf32>
    %568 = arith.addf %566, %567 : vector<8x32xf32>
    %569 = math.tanh %568 : vector<8x32xf32>
    %570 = arith.mulf %565, %569 : vector<8x32xf32>
    %cst_192 = arith.constant dense<0.000000e+00> : vector<8x128xf32>
    %571 = tpu.matmul %570, %3, %cst_192 {dimension_numbers = #tpu.dot_dimension_numbers<[1], [0], [0], [1], [0, 0, 1, 1], [], []>} : vector<8x32xf32>, vector<32x128xf32>, vector<8x128xf32> -> vector<8x128xf32>
    %cst_193 = arith.constant dense<0.000000e+00> : vector<8x128xf32>
    %572 = tpu.matmul %531, %4, %cst_193 {dimension_numbers = #tpu.dot_dimension_numbers<[1], [0], [0], [1], [0, 0, 1, 1], [], []>} : vector<8x32xf32>, vector<32x128xf32>, vector<8x128xf32> -> vector<8x128xf32>
    %573 = arith.addf %571, %572 : vector<8x128xf32>
    %574 = vector.broadcast %5 : vector<1x128xf32> to vector<8x128xf32>
    %575 = arith.addf %573, %574 : vector<8x128xf32>
    %576 = vector.extract_strided_slice %575 {offsets = [0, 0], sizes = [8, 32], strides = [1, 1]} : vector<8x128xf32> to vector<8x32xf32>
    %cst_194 = arith.constant 5.000000e-01 : f32
    %577 = vector.broadcast %cst_194 : f32 to vector<8x32xf32>
    %578 = arith.mulf %577, %576 : vector<8x32xf32>
    %579 = math.tanh %578 : vector<8x32xf32>
    %cst_195 = arith.constant 5.000000e-01 : f32
    %580 = vector.broadcast %cst_195 : f32 to vector<8x32xf32>
    %581 = arith.mulf %580, %579 : vector<8x32xf32>
    %cst_196 = arith.constant 5.000000e-01 : f32
    %582 = vector.broadcast %cst_196 : f32 to vector<8x32xf32>
    %583 = arith.addf %581, %582 : vector<8x32xf32>
    %584 = vector.extract_strided_slice %575 {offsets = [0, 32], sizes = [8, 32], strides = [1, 1]} : vector<8x128xf32> to vector<8x32xf32>
    %cst_197 = arith.constant 5.000000e-01 : f32
    %585 = vector.broadcast %cst_197 : f32 to vector<8x32xf32>
    %586 = arith.mulf %585, %584 : vector<8x32xf32>
    %587 = math.tanh %586 : vector<8x32xf32>
    %cst_198 = arith.constant 5.000000e-01 : f32
    %588 = vector.broadcast %cst_198 : f32 to vector<8x32xf32>
    %589 = arith.mulf %588, %587 : vector<8x32xf32>
    %cst_199 = arith.constant 5.000000e-01 : f32
    %590 = vector.broadcast %cst_199 : f32 to vector<8x32xf32>
    %591 = arith.addf %589, %590 : vector<8x32xf32>
    %592 = vector.extract_strided_slice %575 {offsets = [0, 64], sizes = [8, 32], strides = [1, 1]} : vector<8x128xf32> to vector<8x32xf32>
    %593 = math.tanh %592 : vector<8x32xf32>
    %594 = vector.extract_strided_slice %575 {offsets = [0, 96], sizes = [8, 32], strides = [1, 1]} : vector<8x128xf32> to vector<8x32xf32>
    %cst_200 = arith.constant 5.000000e-01 : f32
    %595 = vector.broadcast %cst_200 : f32 to vector<8x32xf32>
    %596 = arith.mulf %595, %594 : vector<8x32xf32>
    %597 = math.tanh %596 : vector<8x32xf32>
    %cst_201 = arith.constant 5.000000e-01 : f32
    %598 = vector.broadcast %cst_201 : f32 to vector<8x32xf32>
    %599 = arith.mulf %598, %597 : vector<8x32xf32>
    %cst_202 = arith.constant 5.000000e-01 : f32
    %600 = vector.broadcast %cst_202 : f32 to vector<8x32xf32>
    %601 = arith.addf %599, %600 : vector<8x32xf32>
    %602 = arith.mulf %591, %529 : vector<8x32xf32>
    %603 = arith.mulf %583, %593 : vector<8x32xf32>
    %604 = arith.addf %602, %603 : vector<8x32xf32>
    %605 = math.tanh %604 : vector<8x32xf32>
    %606 = arith.mulf %601, %605 : vector<8x32xf32>
    %c8_i32 = arith.constant 8 : i32
    %c0_203 = arith.constant 0 : index
    %c0_204 = arith.constant 0 : index
    %607 = vector.load %arg8[%c0_203, %c0_204] : memref<8x32xf32, #tpu.memory_space<vmem>>, vector<8x32xf32>
    tpu.vector_store %arg8[%c0_203, %c0_204], %606 {strides = array<i32>} : memref<8x32xf32, #tpu.memory_space<vmem>>, vector<8x32xf32>,
    return
  }
  func.func @transform_0(%arg0: i32) -> (i32, i32, i32) {
    %c0_i32 = arith.constant 0 : i32
    %c0_i32_0 = arith.constant 0 : i32
    %c0_i32_1 = arith.constant 0 : i32
    %c0_i32_2 = arith.constant 0 : i32
    return %c0_i32, %c0_i32_0, %c0_i32_1 : i32, i32, i32
  }
  func.func @transform_1(%arg0: i32) -> (i32, i32) {
    %c0_i32 = arith.constant 0 : i32
    %c0_i32_0 = arith.constant 0 : i32
    %c0_i32_1 = arith.constant 0 : i32
    return %c0_i32, %c0_i32_0 : i32, i32
  }
  func.func @transform_2(%arg0: i32) -> (i32, i32) {
    %c0_i32 = arith.constant 0 : i32
    %c0_i32_0 = arith.constant 0 : i32
    %c0_i32_1 = arith.constant 0 : i32
    return %c0_i32, %c0_i32_0 : i32, i32
  }
  func.func @transform_3(%arg0: i32) -> (i32, i32) {
    %c0_i32 = arith.constant 0 : i32
    %c0_i32_0 = arith.constant 0 : i32
    %c0_i32_1 = arith.constant 0 : i32
    return %c0_i32, %c0_i32_0 : i32, i32
  }
  func.func @transform_4(%arg0: i32) -> (i32, i32) {
    %c0_i32 = arith.constant 0 : i32
    %c0_i32_0 = arith.constant 0 : i32
    %c0_i32_1 = arith.constant 0 : i32
    return %c0_i32, %c0_i32_0 : i32, i32
  }
  func.func @transform_5(%arg0: i32) -> (i32, i32) {
    %c0_i32 = arith.constant 0 : i32
    %c0_i32_0 = arith.constant 0 : i32
    %c0_i32_1 = arith.constant 0 : i32
    return %c0_i32, %c0_i32_0 : i32, i32
  }
  func.func @transform_6(%arg0: i32) -> (i32, i32) {
    %c0_i32 = arith.constant 0 : i32
    %c0_i32_0 = arith.constant 0 : i32
    %c0_i32_1 = arith.constant 0 : i32
    return %c0_i32, %c0_i32_0 : i32, i32
  }
  func.func @transform_7(%arg0: i32) -> (i32, i32) {
    %c0_i32 = arith.constant 0 : i32
    %c0_i32_0 = arith.constant 0 : i32
    %c0_i32_1 = arith.constant 0 : i32
    return %c0_i32, %c0_i32_0 : i32, i32
  }
}

</mosaic_0001>

<bundles_post_ra>
// kernel: tpu_custom_call.1
= control target key start
LH: loop header
LB: loop body
LE: loop exit
PB: predicated region body
PF: predicated region fallthrough
CT: control target
= control target key end

     0   :  { %12 = vsyncpa [#allocation3], 0  ;;  %s1931_s0 = inlined_call_operand.hbm [shape: f32[8,8,16], index: 0, kind: input, shape index: {}]   ;;  %s1932_s1 = inlined_call_operand.hbm [shape: f32[16,128], index: 1, kind: input, shape index: {}]   ;;  %s1933_s2 = inlined_call_operand.hbm [shape: f32[32,128], index: 2, kind: input, shape index: {}]   ;;  %s1934_s3 = inlined_call_operand.vmem [shape: f32[1,128], index: 3, kind: input, shape index: {}]   ;;  %s1935_s4 = inlined_call_operand.hbm [shape: f32[32,128], index: 4, kind: input, shape index: {}]   ;;  %s1936_s5 = inlined_call_operand.hbm [shape: f32[32,128], index: 5, kind: input, shape index: {}]   ;;  %s1937_s6 = inlined_call_operand.vmem [shape: f32[1,128], index: 6, kind: input, shape index: {}]   ;;  %s1938_s7 = inlined_call_operand.hbm [shape: f32[8,32], index: 7, kind: output, shape index: {}]  }
   0x1   :  { %13 = vsyncpa [#allocation6], 0 }
   0x2   :  { %14 = vsyncpa [#allocation9], 0 }
   0x3   :  { %15 = vsyncpa [#allocation4], 0  ;;  %s33_s26 = sshll.u32 %s1932_s1, 4  ;;  %s1569_s27 = smov [#allocation5]   ;;  %s34_s26 = int_to_ptr.hbm [resolvable:$true] %s33_s26 }
   0x4   :  { %s35_s28 = sshll.u32 %s1569_s27, 4  ;;  %s61_s8 = sshll.u32 %s1935_s4, 4  ;;  %s36_s28 = int_to_ptr.vmem [resolvable:$true] %s35_s28  ;;  %s62_s8 = int_to_ptr.hbm [resolvable:$true] %s61_s8 }
   0x5   :  { %s1570_s9 = smov 128   ;;  %s1571_s10 = smov 8  }
   0x6   :  { %41 = dma.hbm_to_vmem [thread:$0]  %s34_s26, 256, %s36_s28, [#allocation6], %s1570_s9, %s1570_s9, %s1571_s10  }
   0x7   :  { %s1572_s11 = smov [#allocation8]   ;;  %s20_s15 = sshll.u32 %s1931_s0, 4  ;;  %s21_s15 = int_to_ptr.hbm [resolvable:$true] %s20_s15 }
   0x8   :  { %s63_s12 = sshll.u32 %s1572_s11, 4  ;;  %s46_s17 = sshll.u32 %s1933_s2, 4  ;;  %s64_s12 = int_to_ptr.vmem [resolvable:$true] %s63_s12  ;;  %s47_s17 = int_to_ptr.hbm [resolvable:$true] %s46_s17 }
   0x9   :  { %69 = dma.hbm_to_vmem [thread:$0]  %s62_s8, 512, %s64_s12, [#allocation9], %s1570_s9, %s1570_s9, %s1571_s10  }
   0xa   :  { %s1573_s18 = smov [#allocation2]   ;;  %s1574_s4 = smov [#allocation7]  }
   0xb   :  { %s22_s19 = sshll.u32 %s1573_s18, 4  ;;  %s48_s20 = sshll.u32 %s1574_s4, 4  ;;  %s23_s19 = int_to_ptr.vmem [resolvable:$true] %s22_s19  ;;  %s49_s20 = int_to_ptr.vmem [resolvable:$true] %s48_s20 }
   0xc   :  { %28 = dma.hbm_to_vmem [thread:$0]  %s21_s15, 1024, %s23_s19, [#allocation3], %s1570_s9, %s1570_s9, %s1571_s10  }
   0xd   :  { %s74_s23 = sshll.u32 %s1936_s5, 4  ;;  %s1575_s0 = smov [#allocation10]   ;;  %s75_s23 = int_to_ptr.hbm [resolvable:$true] %s74_s23 }
   0xe   :  { %54 = dma.hbm_to_vmem [thread:$0]  %s47_s17, 512, %s49_s20, [#allocation6], %s1570_s9, %s1570_s9, %s1571_s10  }
   0xf   :  { %s76_s24 = sshll.u32 %s1575_s0, 4  ;;  %s77_s24 = int_to_ptr.vmem [resolvable:$true] %s76_s24 }
  0x10   :  { %82 = dma.hbm_to_vmem [thread:$0]  %s75_s23, 512, %s77_s24, [#allocation9], %s1570_s9, %s1570_s9, %s1571_s10  }
  0x11   :  { %1561 = dma.done.wait [#allocation3], 1024  }
  0x12   :  { %1562 = vsyncadd [#allocation3], 4294966272 }
  0x13   :  { %1563 = dma.done.wait [#allocation6], 768  }
  0x14   :  { %1564 = vsyncadd [#allocation6], 4294966528 }
  0x15   :  { %1565 = dma.done.wait [#allocation9], 1024  }
  0x16   :  { %1566 = vsyncadd [#allocation9], 4294966272  ;;  %v1635_v0 = vld [vmem:[#allocation7 + $0x18] sm:$0xff]  ;;  %v1637_v1 = vld [vmem:[#allocation7 + $0x10] sm:$0xff]  ;;  %vm146_vm0 = vcmask 130048   ;;  %v1576_v7 = vmov 0.0  }
  0x17   :  { %138 = vmatpush.msra.mxu0 %v1635_v0  ;;  %v1640_v2 = vld [vmem:[#allocation7 + $0x8] sm:$0xff]  ;;  %v1642_v3 = vld [vmem:[#allocation5 + $0x8] sm:$0xff]  ;;  %v1644_v4 = vld [vmem:[#allocation5] sm:$0xff]  ;;  %s1577_s25 = smov 64   ;;  %s1578_s26 = smov 32   ;;  %vm122_vm1 = vcmask 261120  }
  0x18   :  { %164 = vmatpush.msra.mxu1 %v1642_v3  ;;  %v121_v5 = vld [vmem:[#allocation2] sm:$0xff]  ;;  %v1648_v6 = vld [vmem:[#allocation7] sm:$0xff]  ;;  %v1678_v24 = vld [vmem:[#allocation10 + $0x18] sm:$0xff]  ;;  %s1266_s8 = sshll.u32 %s1938_s7, 4  ;;  %s1267_s8 = int_to_ptr.hbm [resolvable:$true] %s1266_s8 }
  0x19   :  { %139 = vmatpush.msra.mxu0 %v1637_v1  ;;  %v1669_v9 = vld [vmem:[%s1934_s3] ss:$0 sm:$0xff]  ;;  %v1680_v25 = vld [vmem:[#allocation8 + $0x18] sm:$0xff]  ;;  %208 = vmatpush.msra.mxu2 %v1678_v24  ;;  %v1688_v28 = vld [vmem:[#allocation10 + $0x8] sm:$0xff] }
  0x1a   :  { %165 = vmatpush.msra.mxu1 %v1644_v4  ;;  %v1682_v26 = vld [vmem:[#allocation10 + $0x10] sm:$0xff]  ;;  %233 = vmatpush.msra.mxu3 %v1680_v25  ;;  %v1690_v29 = vld [vmem:[#allocation8 + $0x8] sm:$0xff]  ;;  %v1694_v30 = vld [vmem:[#allocation10] sm:$0xff] }
  0x1b   :  { %140 = vmatpush.msra.mxu0 %v1640_v2  ;;  %1278 = vmatmul.msk.f32.vlgmr.msra.gmra.mxu1 %vm146_vm0, %v121_v5  ;;  %v1686_v27 = vld [vmem:[#allocation8 + $0x10] sm:$0xff]  ;;  %v1696_v31 = vld [vmem:[#allocation8] sm:$0xff]  ;;  %v268_v34 = vld [vmem:[#allocation2 + $0x8] sm:$0xff] }
  0x1c   :  { %281 = vmatpush.msrb.mxu1 %v1635_v0  ;;  %209 = vmatpush.msra.mxu2 %v1682_v26  ;;  %v1731_v37 = vld [vmem:[%s1937_s6] ss:$0 sm:$0xff]  ;;  %s1579_s6 = smov [#allocation11]  }
  0x1d   :  { %141 = vmatpush.msra.mxu0 %v1648_v6  ;;  %234 = vmatpush.msra.mxu3 %v1686_v27  ;;  %s1264_s28 = sshll.u32 %s1579_s6, 4  ;;  %s1265_s28 = int_to_ptr.vmem [resolvable:$true] %s1264_s28 }
  0x1e   :  { %142 = vmatmul.f32.vlgmr.msra.gmra.mxu0 %v1576_v7  ;;  %282 = vmatpush.msrb.mxu1 %v1637_v1 }
  0x1f   :  { %306 = vmatpush.msrb.mxu0 %v1642_v3  ;;  %210 = vmatpush.msra.mxu2 %v1688_v28 }
  0x20   :  { %283 = vmatpush.msrb.mxu1 %v1640_v2  ;;  %235 = vmatpush.msra.mxu3 %v1690_v29 }
  0x21   :  { %307 = vmatpush.msrb.mxu0 %v1644_v4  ;;  %211 = vmatpush.msra.mxu2 %v1694_v30 }
  0x22   :  { %284 = vmatpush.msrb.mxu1 %v1648_v6  ;;  %236 = vmatpush.msra.mxu3 %v1696_v31 }
  0x23   :  { %447 = vmatpush.msra.mxu0 %v1642_v3  ;;  %212 = vmatmul.f32.vlgmr.msra.gmra.mxu2 %v1576_v7 }
  0x24   :  { %422 = vmatpush.msra.mxu1 %v1635_v0  ;;  %377 = vmatpush.msrb.mxu3 %v1680_v25 }
  0x25   :  { %448 = vmatpush.msra.mxu0 %v1644_v4  ;;  %352 = vmatpush.msrb.mxu2 %v1678_v24 }
  0x26   :  { %423 = vmatpush.msra.mxu1 %v1637_v1  ;;  %378 = vmatpush.msrb.mxu3 %v1686_v27 }
  0x27   :  { %353 = vmatpush.msrb.mxu2 %v1682_v26  ;;  %1281 = vmatmul.msk.f32.vlgmr.msrb.gmra.mxu0 %vm146_vm0, %v268_v34 }
  0x28   :  { %424 = vmatpush.msra.mxu1 %v1640_v2  ;;  %379 = vmatpush.msrb.mxu3 %v1690_v29 }
  0x29   :  { %354 = vmatpush.msrb.mxu2 %v1688_v28  ;;  %588 = vmatpush.msrb.mxu0 %v1642_v3 }
  0x2a   :  { %425 = vmatpush.msra.mxu1 %v1648_v6  ;;  %380 = vmatpush.msrb.mxu3 %v1696_v31 }
  0x2b   :  { %355 = vmatpush.msrb.mxu2 %v1694_v30  ;;  %589 = vmatpush.msrb.mxu0 %v1644_v4 }
  0x2d   :  { %493 = vmatpush.msra.mxu2 %v1678_v24 }
  0x2f   :  { %494 = vmatpush.msra.mxu2 %v1682_v26 }
  0x31   :  { %495 = vmatpush.msra.mxu2 %v1688_v28 }
  0x33   :  { %496 = vmatpush.msra.mxu2 %v1694_v30 }
  0x98   :  { %v167_v8 = vpop.f32.mrf.mxu1 }
  0x9b   :  { %v143_v10 = vpop.f32.mrf.mxu0 }
  0x9c   :  { %v168_v11 = vadd.f32 %v167_v8, %v143_v10 }
  0x9e   :  { %v173_v12 = vadd.f32 %v1669_v9, %v168_v11 }
  0xa0   :  { %1321 = vtanh.f32 %v173_v12  ;;  %v174_v14 = vmul.f32 0.5, %v173_v12 }
  0xa2   :  { %1323 = vtanh.f32 %v174_v14  ;;  %v409_v14 = vld [vmem:[#allocation2 + $0x10] sm:$0xff] }
  0xa3   :  { %1285 = vmatmul.msk.f32.vlgmr.msra.gmra.mxu0 %vm146_vm0, %v409_v14 }
  0xa4   :  { %v309_v41 = vpop.f32.mrf.mxu0  ;;  %729 = vmatpush.msra.mxu0 %v1642_v3 }
  0xa6   :  { %v1322_v13 = vpop.eup %1321  ;;  %v213_v36 = vpop.f32.mrf.mxu2  ;;  %730 = vmatpush.msra.mxu0 %v1644_v4 }
  0xa7   :  { %181 = vrot.lane.b32.xlu0 %v1322_v13, %s1577_s25 }
  0xa8   :  { %v1324_v15 = vpop.eup %1323 }
  0xa9   :  { %v176_v16 = vmul.f32 0.5, %v1324_v15 }
  0xab   :  { %v177_v17 = vadd.f32 0.5, %v176_v16 }
  0xad   :  { %v179_v20 = vmul.f32 0.0, %v177_v17 }
 0x119   :  { %v182_v18 = vpop.permute.xlu0 %181 }
 0x11a   :  { %v184_v19 = vmul.f32 %v182_v18, %v177_v17 }
 0x11c   :  { %186 = vrot.lane.b32.xlu0 %v184_v19, %s1578_s26 }
 0x18e   :  { %v187_v21 = vpop.permute.xlu0 %186 }
 0x18f   :  { %v1674_v22 = vadd.f32 %v187_v21, %v179_v20 }
 0x191   :  { %1325 = vtanh.f32 %v1674_v22 }
 0x197   :  { %v1326_v23 = vpop.eup %1325 }
 0x198   :  { %192 = vrot.lane.b32.xlu1 %v1326_v23, %s1577_s25 }
 0x20a   :  { %v193_v32 = vpop.permute.xlu1 %192 }
 0x20b   :  { %v195_v33 = vmul.f32 %v193_v32, %v177_v17  ;;  %v450_v17 = vpop.f32.mrf.mxu0 }
 0x20d   :  { %217 = vrot.lane.b32.xlu1 %v195_v33, %s1578_s26 }
 0x27f   :  { %v218_v35 = vpop.permute.xlu1 %217 }
 0x280   :  { %1279 = vmatmul.msk.f32.vlgmr.msra.gmra.mxu3 %vm122_vm1, %v218_v35  ;;  %1280 = vmatmul.msk.f32.vlgmr.msrb.gmra.mxu1 %vm122_vm1, %v218_v35 }
 0x281   :  { %563 = vmatpush.msrb.mxu1 %v1635_v0  ;;  %518 = vmatpush.msra.mxu3 %v1680_v25 }
 0x283   :  { %564 = vmatpush.msrb.mxu1 %v1637_v1  ;;  %519 = vmatpush.msra.mxu3 %v1686_v27 }
 0x285   :  { %565 = vmatpush.msrb.mxu1 %v1640_v2  ;;  %520 = vmatpush.msra.mxu3 %v1690_v29 }
 0x287   :  { %566 = vmatpush.msrb.mxu1 %v1648_v6  ;;  %521 = vmatpush.msra.mxu3 %v1696_v31 }
 0x2fd   :  { %v286_v40 = vpop.f32.mrf.mxu1 }
 0x2fe   :  { %v310_v43 = vadd.f32 %v309_v41, %v286_v40 }
 0x300   :  { %v312_v44 = vadd.f32 %v1669_v9, %v310_v43 }
 0x302   :  { %v313_v48 = vmul.f32 0.5, %v312_v44 }
 0x303   :  { %v238_v38 = vpop.f32.mrf.mxu3 }
 0x304   :  { %v239_v39 = vadd.f32 %v238_v38, %v213_v36 }
 0x306   :  { %v244_v42 = vadd.f32 %v1731_v37, %v239_v39 }
 0x308   :  { %1327 = vtanh.f32 %v244_v42  ;;  %v245_v47 = vmul.f32 0.5, %v244_v42 }
 0x309   :  { %1329 = vtanh.f32 %v312_v44 }
 0x30a   :  { %1331 = vtanh.f32 %v245_v47 }
 0x30b   :  { %1333 = vtanh.f32 %v313_v48 }
 0x30e   :  { %v1328_v45 = vpop.eup %1327 }
 0x30f   :  { %252 = vrot.lane.b32.xlu2 %v1328_v45, %s1577_s25  ;;  %v1330_v46 = vpop.eup %1329 }
 0x310   :  { %v1332_v49 = vpop.eup %1331 }
 0x311   :  { %v247_v50 = vmul.f32 0.5, %v1332_v49  ;;  %v1334_v52 = vpop.eup %1333 }
 0x312   :  { %v315_v55 = vmul.f32 0.5, %v1334_v52 }
 0x313   :  { %v248_v51 = vadd.f32 0.5, %v247_v50 }
 0x314   :  { %v316_v56 = vadd.f32 0.5, %v315_v55 }
 0x315   :  { %v250_v59 = vmul.f32 0.0, %v248_v51 }
 0x316   :  { %v318_v62 = vmul.f32 %v316_v56, %v1674_v22 }
 0x317   :  { %320 = vrot.lane.b32.xlu2 %v1330_v46, %s1577_s25 }
 0x369   :  { %v253_v53 = vpop.permute.xlu2 %252 }
 0x36a   :  { %v255_v54 = vmul.f32 %v253_v53, %v248_v51 }
 0x36c   :  { %257 = vrot.lane.b32.xlu0 %v255_v54, %s1578_s26 }
 0x371   :  { %v321_v57 = vpop.permute.xlu2 %320 }
 0x372   :  { %v323_v58 = vmul.f32 %v321_v57, %v316_v56 }
 0x374   :  { %325 = vrot.lane.b32.xlu1 %v323_v58, %s1578_s26 }
 0x3de   :  { %v258_v60 = vpop.permute.xlu0 %257 }
 0x3df   :  { %v1739_v61 = vadd.f32 %v258_v60, %v250_v59  ;;  %v550_v60 = vld [vmem:[#allocation2 + $0x18] sm:$0xff] }
 0x3e0   :  { %1289 = vmatmul.msk.f32.vlgmr.msrb.gmra.mxu0 %vm146_vm0, %v550_v60 }
 0x3e1   :  { %1335 = vtanh.f32 %v1739_v61  ;;  %870 = vmatpush.msrb.mxu0 %v1642_v3 }
 0x3e3   :  { %871 = vmatpush.msrb.mxu0 %v1644_v4 }
 0x3e6   :  { %v326_v63 = vpop.permute.xlu1 %325 }
 0x3e7   :  { %v1336_v5 = vpop.eup %1335  ;;  %v1743_v7 = vadd.f32 %v326_v63, %v318_v62 }
 0x3e8   :  { %263 = vrot.lane.b32.xlu2 %v1336_v5, %s1577_s25 }
 0x3e9   :  { %1337 = vtanh.f32 %v1743_v7 }
 0x3ef   :  { %v1338_v8 = vpop.eup %1337 }
 0x3f0   :  { %331 = vrot.lane.b32.xlu0 %v1338_v8, %s1577_s25 }
 0x442   :  { %v264_v10 = vpop.permute.xlu2 %263 }
 0x443   :  { %v266_v11 = vmul.f32 %v264_v10, %v248_v51 }
 0x445   :  { %336 = vrot.lane.b32.xlu1 %v266_v11, %s1578_s26 }
 0x45d   :  { %v591_v63 = vpop.f32.mrf.mxu0 }
 0x462   :  { %v332_v12 = vpop.permute.xlu0 %331 }
 0x463   :  { %v334_v13 = vmul.f32 %v332_v12, %v316_v56 }
 0x465   :  { %361 = vrot.lane.b32.xlu2 %v334_v13, %s1578_s26 }
 0x4b7   :  { %v337_v15 = vpop.permute.xlu1 %336 }
 0x4b8   :  { %1282 = vmatmul.msk.f32.vlgmr.msrb.gmra.mxu2 %vm122_vm1, %v337_v15 }
 0x4b9   :  { %634 = vmatpush.msrb.mxu2 %v1678_v24 }
 0x4bb   :  { %635 = vmatpush.msrb.mxu2 %v1682_v26 }
 0x4bd   :  { %636 = vmatpush.msrb.mxu2 %v1688_v28 }
 0x4bf   :  { %v362_v16 = vpop.permute.xlu2 %361  ;;  %637 = vmatpush.msrb.mxu2 %v1694_v30 }
 0x4c0   :  { %1283 = vmatmul.msk.f32.vlgmr.msrb.gmra.mxu3 %vm122_vm1, %v362_v16  ;;  %1284 = vmatmul.msk.f32.vlgmr.msra.gmra.mxu1 %vm122_vm1, %v362_v16 }
 0x4c1   :  { %659 = vmatpush.msrb.mxu3 %v1680_v25  ;;  %704 = vmatpush.msra.mxu1 %v1635_v0 }
 0x4c3   :  { %660 = vmatpush.msrb.mxu3 %v1686_v27  ;;  %705 = vmatpush.msra.mxu1 %v1637_v1 }
 0x4c5   :  { %661 = vmatpush.msrb.mxu3 %v1690_v29  ;;  %706 = vmatpush.msra.mxu1 %v1640_v2 }
 0x4c7   :  { %662 = vmatpush.msrb.mxu3 %v1696_v31  ;;  %707 = vmatpush.msra.mxu1 %v1648_v6 }
 0x53b   :  { %v357_v21 = vpop.f32.mrf.mxu2 }
 0x53d   :  { %v427_v18 = vpop.f32.mrf.mxu1 }
 0x53e   :  { %v451_v19 = vadd.f32 %v450_v17, %v427_v18 }
 0x540   :  { %v453_v20 = vadd.f32 %v1669_v9, %v451_v19 }
 0x542   :  { %1339 = vtanh.f32 %v453_v20  ;;  %v454_v35 = vmul.f32 0.5, %v453_v20 }
 0x543   :  { %v382_v22 = vpop.f32.mrf.mxu3 }
 0x544   :  { %v383_v23 = vadd.f32 %v382_v22, %v357_v21 }
 0x546   :  { %v385_v32 = vadd.f32 %v1731_v37, %v383_v23 }
 0x548   :  { %v1340_v33 = vpop.eup %1339  ;;  %1341 = vtanh.f32 %v385_v32  ;;  %v386_v36 = vmul.f32 0.5, %v385_v32 }
 0x549   :  { %461 = vrot.lane.b32.xlu1 %v1340_v33, %s1577_s25  ;;  %1343 = vtanh.f32 %v454_v35 }
 0x54a   :  { %1345 = vtanh.f32 %v386_v36 }
 0x54e   :  { %v1342_v34 = vpop.eup %1341 }
 0x54f   :  { %393 = vrot.lane.b32.xlu0 %v1342_v34, %s1577_s25  ;;  %v1344_v38 = vpop.eup %1343 }
 0x550   :  { %v456_v39 = vmul.f32 0.5, %v1344_v38  ;;  %v1346_v40 = vpop.eup %1345 }
 0x551   :  { %v388_v44 = vmul.f32 0.5, %v1346_v40 }
 0x552   :  { %v457_v41 = vadd.f32 0.5, %v456_v39 }
 0x553   :  { %v389_v45 = vadd.f32 0.5, %v388_v44 }
 0x554   :  { %v459_v52 = vmul.f32 %v457_v41, %v1743_v7 }
 0x555   :  { %v391_v48 = vmul.f32 %v389_v45, %v1739_v61 }
 0x5bb   :  { %v462_v42 = vpop.permute.xlu1 %461 }
 0x5bc   :  { %v464_v43 = vmul.f32 %v462_v42, %v457_v41 }
 0x5be   :  { %466 = vrot.lane.b32.xlu0 %v464_v43, %s1578_s26 }
 0x5c1   :  { %v394_v46 = vpop.permute.xlu0 %393 }
 0x5c2   :  { %v396_v47 = vmul.f32 %v394_v46, %v389_v45 }
 0x5c4   :  { %398 = vrot.lane.b32.xlu2 %v396_v47, %s1578_s26 }
 0x61e   :  { %v399_v49 = vpop.permute.xlu2 %398 }
 0x61f   :  { %v1775_v50 = vadd.f32 %v399_v49, %v391_v48  ;;  %v691_v49 = vld [vmem:[#allocation2 + $0x20] sm:$0xff] }
 0x620   :  { %1293 = vmatmul.msk.f32.vlgmr.msra.gmra.mxu0 %vm146_vm0, %v691_v49 }
 0x621   :  { %1347 = vtanh.f32 %v1775_v50  ;;  %1011 = vmatpush.msra.mxu0 %v1642_v3 }
 0x623   :  { %1012 = vmatpush.msra.mxu0 %v1644_v4 }
 0x627   :  { %v1348_v51 = vpop.eup %1347 }
 0x628   :  { %404 = vrot.lane.b32.xlu1 %v1348_v51, %s1577_s25 }
 0x630   :  { %v467_v53 = vpop.permute.xlu0 %466 }
 0x631   :  { %v469_v54 = vadd.f32 %v467_v53, %v459_v52 }
 0x633   :  { %1349 = vtanh.f32 %v469_v54 }
 0x639   :  { %v1350_v55 = vpop.eup %1349 }
 0x63a   :  { %472 = vrot.lane.b32.xlu2 %v1350_v55, %s1577_s25 }
 0x694   :  { %v473_v56 = vpop.permute.xlu2 %472 }
 0x695   :  { %v475_v57 = vmul.f32 %v473_v56, %v457_v41 }
 0x697   :  { %502 = vrot.lane.b32.xlu1 %v475_v57, %s1578_s26 }
 0x69a   :  { %v405_v58 = vpop.permute.xlu1 %404 }
 0x69b   :  { %v407_v59 = vmul.f32 %v405_v58, %v389_v45 }
 0x69d   :  { %477 = vrot.lane.b32.xlu0 %v407_v59, %s1578_s26  ;;  %v732_v52 = vpop.f32.mrf.mxu0 }
 0x709   :  { %v503_v61 = vpop.permute.xlu1 %502 }
 0x70a   :  { %1287 = vmatmul.msk.f32.vlgmr.msra.gmra.mxu3 %vm122_vm1, %v503_v61  ;;  %1288 = vmatmul.msk.f32.vlgmr.msrb.gmra.mxu1 %vm122_vm1, %v503_v61 }
 0x70b   :  { %800 = vmatpush.msra.mxu3 %v1680_v25  ;;  %845 = vmatpush.msrb.mxu1 %v1635_v0 }
 0x70d   :  { %801 = vmatpush.msra.mxu3 %v1686_v27  ;;  %846 = vmatpush.msrb.mxu1 %v1637_v1 }
 0x70f   :  { %v478_v62 = vpop.permute.xlu0 %477  ;;  %802 = vmatpush.msra.mxu3 %v1690_v29  ;;  %847 = vmatpush.msrb.mxu1 %v1640_v2 }
 0x710   :  { %1286 = vmatmul.msk.f32.vlgmr.msra.gmra.mxu2 %vm122_vm1, %v478_v62 }
 0x711   :  { %803 = vmatpush.msra.mxu3 %v1696_v31  ;;  %848 = vmatpush.msrb.mxu1 %v1648_v6 }
 0x712   :  { %775 = vmatpush.msra.mxu2 %v1678_v24 }
 0x714   :  { %776 = vmatpush.msra.mxu2 %v1682_v26 }
 0x716   :  { %777 = vmatpush.msra.mxu2 %v1688_v28 }
 0x718   :  { %778 = vmatpush.msra.mxu2 %v1694_v30 }
 0x787   :  { %v568_v5 = vpop.f32.mrf.mxu1 }
 0x788   :  { %v592_v7 = vadd.f32 %v591_v63, %v568_v5 }
 0x78a   :  { %v594_v8 = vadd.f32 %v1669_v9, %v592_v7 }
 0x78c   :  { %1351 = vtanh.f32 %v594_v8  ;;  %v595_v18 = vmul.f32 0.5, %v594_v8 }
 0x78d   :  { %v523_v11 = vpop.f32.mrf.mxu3 }
 0x792   :  { %v1352_v10 = vpop.eup %1351 }
 0x793   :  { %v498_v12 = vpop.f32.mrf.mxu2  ;;  %602 = vrot.lane.b32.xlu0 %v1352_v10, %s1577_s25 }
 0x794   :  { %v524_v13 = vadd.f32 %v523_v11, %v498_v12 }
 0x796   :  { %v526_v14 = vadd.f32 %v1731_v37, %v524_v13 }
 0x798   :  { %1353 = vtanh.f32 %v526_v14  ;;  %v527_v16 = vmul.f32 0.5, %v526_v14 }
 0x79a   :  { %1355 = vtanh.f32 %v527_v16 }
 0x79b   :  { %1357 = vtanh.f32 %v595_v18 }
 0x79e   :  { %v1354_v15 = vpop.eup %1353 }
 0x79f   :  { %534 = vrot.lane.b32.xlu2 %v1354_v15, %s1577_s25 }
 0x7a0   :  { %v1356_v17 = vpop.eup %1355 }
 0x7a1   :  { %v529_v19 = vmul.f32 0.5, %v1356_v17  ;;  %v1358_v23 = vpop.eup %1357 }
 0x7a2   :  { %v597_v32 = vmul.f32 0.5, %v1358_v23 }
 0x7a3   :  { %v530_v20 = vadd.f32 0.5, %v529_v19 }
 0x7a4   :  { %v598_v33 = vadd.f32 0.5, %v597_v32 }
 0x7a5   :  { %v532_v41 = vmul.f32 %v530_v20, %v1775_v50 }
 0x7a6   :  { %v600_v36 = vmul.f32 %v598_v33, %v469_v54 }
 0x7f9   :  { %v535_v21 = vpop.permute.xlu2 %534 }
 0x7fa   :  { %v537_v22 = vmul.f32 %v535_v21, %v530_v20 }
 0x7fc   :  { %539 = vrot.lane.b32.xlu1 %v537_v22, %s1578_s26 }
 0x805   :  { %v603_v34 = vpop.permute.xlu0 %602 }
 0x806   :  { %v605_v35 = vmul.f32 %v603_v34, %v598_v33 }
 0x808   :  { %607 = vrot.lane.b32.xlu2 %v605_v35, %s1578_s26 }
 0x862   :  { %v608_v38 = vpop.permute.xlu2 %607 }
 0x863   :  { %v1807_v39 = vadd.f32 %v608_v38, %v600_v36  ;;  %v832_v38 = vld [vmem:[#allocation2 + $0x28] sm:$0xff] }
 0x864   :  { %1297 = vmatmul.msk.f32.vlgmr.msrb.gmra.mxu0 %vm146_vm0, %v832_v38 }
 0x865   :  { %1359 = vtanh.f32 %v1807_v39  ;;  %1152 = vmatpush.msrb.mxu0 %v1642_v3 }
 0x867   :  { %1153 = vmatpush.msrb.mxu0 %v1644_v4 }
 0x86b   :  { %v1360_v40 = vpop.eup %1359 }
 0x86c   :  { %613 = vrot.lane.b32.xlu1 %v1360_v40, %s1577_s25 }
 0x86e   :  { %v540_v42 = vpop.permute.xlu1 %539 }
 0x86f   :  { %v1812_v43 = vadd.f32 %v540_v42, %v532_v41 }
 0x871   :  { %1361 = vtanh.f32 %v1812_v43 }
 0x877   :  { %v1362_v44 = vpop.eup %1361 }
 0x878   :  { %545 = vrot.lane.b32.xlu0 %v1362_v44, %s1577_s25 }
 0x8de   :  { %v614_v45 = vpop.permute.xlu1 %613 }
 0x8df   :  { %v616_v46 = vmul.f32 %v614_v45, %v598_v33 }
 0x8e1   :  { %643 = vrot.lane.b32.xlu0 %v616_v46, %s1578_s26 }
 0x8ea   :  { %v546_v47 = vpop.permute.xlu0 %545 }
 0x8eb   :  { %v548_v48 = vmul.f32 %v546_v47, %v530_v20 }
 0x8ed   :  { %618 = vrot.lane.b32.xlu2 %v548_v48, %s1578_s26 }
 0x947   :  { %v619_v50 = vpop.permute.xlu2 %618 }
 0x948   :  { %1290 = vmatmul.msk.f32.vlgmr.msrb.gmra.mxu2 %vm122_vm1, %v619_v50 }
 0x949   :  { %916 = vmatpush.msrb.mxu2 %v1678_v24 }
 0x94b   :  { %917 = vmatpush.msrb.mxu2 %v1682_v26 }
 0x94d   :  { %918 = vmatpush.msrb.mxu2 %v1688_v28 }
 0x94f   :  { %919 = vmatpush.msrb.mxu2 %v1694_v30 }
 0x953   :  { %v644_v51 = vpop.permute.xlu0 %643 }
 0x954   :  { %1291 = vmatmul.msk.f32.vlgmr.msrb.gmra.mxu3 %vm122_vm1, %v644_v51  ;;  %1292 = vmatmul.msk.f32.vlgmr.msra.gmra.mxu1 %vm122_vm1, %v644_v51 }
 0x955   :  { %941 = vmatpush.msrb.mxu3 %v1680_v25  ;;  %986 = vmatpush.msra.mxu1 %v1635_v0 }
 0x957   :  { %942 = vmatpush.msrb.mxu3 %v1686_v27  ;;  %987 = vmatpush.msra.mxu1 %v1637_v1 }
 0x959   :  { %943 = vmatpush.msrb.mxu3 %v1690_v29  ;;  %988 = vmatpush.msra.mxu1 %v1640_v2 }
 0x95b   :  { %944 = vmatpush.msrb.mxu3 %v1696_v31  ;;  %989 = vmatpush.msra.mxu1 %v1648_v6 }
 0x9cb   :  { %v639_v56 = vpop.f32.mrf.mxu2 }
 0x9d1   :  { %v709_v53 = vpop.f32.mrf.mxu1 }
 0x9d2   :  { %v733_v54 = vadd.f32 %v732_v52, %v709_v53 }
 0x9d4   :  { %v735_v55 = vadd.f32 %v1669_v9, %v733_v54 }
 0x9d6   :  { %1363 = vtanh.f32 %v735_v55  ;;  %v736_v62 = vmul.f32 0.5, %v735_v55 }
 0x9d7   :  { %v664_v57 = vpop.f32.mrf.mxu3 }
 0x9d8   :  { %v665_v58 = vadd.f32 %v664_v57, %v639_v56 }
 0x9da   :  { %v667_v59 = vadd.f32 %v1731_v37, %v665_v58 }
 0x9dc   :  { %v1364_v60 = vpop.eup %1363  ;;  %1365 = vtanh.f32 %v667_v59  ;;  %v668_v11 = vmul.f32 0.5, %v667_v59 }
 0x9dd   :  { %743 = vrot.lane.b32.xlu2 %v1364_v60, %s1577_s25  ;;  %1367 = vtanh.f32 %v736_v62 }
 0x9de   :  { %1369 = vtanh.f32 %v668_v11 }
 0x9e2   :  { %v1366_v61 = vpop.eup %1365 }
 0x9e3   :  { %675 = vrot.lane.b32.xlu1 %v1366_v61, %s1577_s25  ;;  %v1368_v63 = vpop.eup %1367 }
 0x9e4   :  { %v738_v5 = vmul.f32 0.5, %v1368_v63  ;;  %v1370_v12 = vpop.eup %1369 }
 0x9e5   :  { %v670_v13 = vmul.f32 0.5, %v1370_v12  ;;  %v973_v12 = vld [vmem:[#allocation2 + $0x30] sm:$0xff] }
 0x9e6   :  { %v739_v7 = vadd.f32 0.5, %v738_v5  ;;  %1301 = vmatmul.msk.f32.vlgmr.msra.gmra.mxu0 %vm146_vm0, %v973_v12 }
 0x9e7   :  { %v671_v14 = vadd.f32 0.5, %v670_v13 }
 0x9e8   :  { %v741_v17 = vmul.f32 %v739_v7, %v1807_v39 }
 0x9e9   :  { %v673_v21 = vmul.f32 %v671_v14, %v1812_v43 }
 0xa37   :  { %v744_v8 = vpop.permute.xlu2 %743 }
 0xa38   :  { %v746_v10 = vmul.f32 %v744_v8, %v739_v7 }
 0xa3a   :  { %748 = vrot.lane.b32.xlu1 %v746_v10, %s1578_s26 }
 0xa55   :  { %v676_v15 = vpop.permute.xlu1 %675 }
 0xa56   :  { %v678_v16 = vmul.f32 %v676_v15, %v671_v14 }
 0xa58   :  { %680 = vrot.lane.b32.xlu0 %v678_v16, %s1578_s26 }
 0xaac   :  { %v749_v18 = vpop.permute.xlu1 %748 }
 0xaad   :  { %v1843_v19 = vadd.f32 %v749_v18, %v741_v17 }
 0xaaf   :  { %1371 = vtanh.f32 %v1843_v19 }
 0xab5   :  { %v1372_v20 = vpop.eup %1371 }
 0xab6   :  { %754 = vrot.lane.b32.xlu0 %v1372_v20, %s1577_s25 }
 0xaca   :  { %v681_v22 = vpop.permute.xlu0 %680 }
 0xacb   :  { %v1848_v23 = vadd.f32 %v681_v22, %v673_v21 }
 0xacd   :  { %1373 = vtanh.f32 %v1848_v23 }
 0xad3   :  { %v1374_v32 = vpop.eup %1373 }
 0xad4   :  { %686 = vrot.lane.b32.xlu2 %v1374_v32, %s1577_s25 }
 0xb28   :  { %v755_v33 = vpop.permute.xlu0 %754 }
 0xb29   :  { %v757_v34 = vmul.f32 %v755_v33, %v739_v7 }
 0xb2b   :  { %784 = vrot.lane.b32.xlu2 %v757_v34, %s1578_s26 }
 0xb2e   :  { %v687_v35 = vpop.permute.xlu2 %686 }
 0xb2f   :  { %v689_v36 = vmul.f32 %v687_v35, %v671_v14 }
 0xb31   :  { %759 = vrot.lane.b32.xlu1 %v689_v36, %s1578_s26 }
 0xb85   :  { %v785_v39 = vpop.permute.xlu2 %784 }
 0xb86   :  { %1295 = vmatmul.msk.f32.vlgmr.msra.gmra.mxu3 %vm122_vm1, %v785_v39  ;;  %1296 = vmatmul.msk.f32.vlgmr.msrb.gmra.mxu1 %vm122_vm1, %v785_v39 }
 0xb87   :  { %1082 = vmatpush.msra.mxu3 %v1680_v25  ;;  %1127 = vmatpush.msrb.mxu1 %v1635_v0  ;;  %v873_v0 = vpop.f32.mrf.mxu0 }
 0xb89   :  { %1083 = vmatpush.msra.mxu3 %v1686_v27  ;;  %1128 = vmatpush.msrb.mxu1 %v1637_v1 }
 0xb8b   :  { %1084 = vmatpush.msra.mxu3 %v1690_v29  ;;  %1129 = vmatpush.msrb.mxu1 %v1640_v2 }
 0xb8d   :  { %1085 = vmatpush.msra.mxu3 %v1696_v31  ;;  %1130 = vmatpush.msrb.mxu1 %v1648_v6 }
 0xb8f   :  { %v1014_v15 = vpop.f32.mrf.mxu0 }
 0xba3   :  { %v760_v3 = vpop.permute.xlu1 %759 }
 0xba4   :  { %1294 = vmatmul.msk.f32.vlgmr.msra.gmra.mxu2 %vm122_vm1, %v760_v3 }
 0xba5   :  { %1057 = vmatpush.msra.mxu2 %v1678_v24 }
 0xba7   :  { %1058 = vmatpush.msra.mxu2 %v1682_v26 }
 0xba9   :  { %1059 = vmatpush.msra.mxu2 %v1688_v28 }
 0xbab   :  { %1060 = vmatpush.msra.mxu2 %v1694_v30 }
 0xc03   :  { %v850_v1 = vpop.f32.mrf.mxu1 }
 0xc04   :  { %v874_v4 = vadd.f32 %v873_v0, %v850_v1 }
 0xc06   :  { %v876_v2 = vadd.f32 %v1669_v9, %v874_v4 }
 0xc08   :  { %1375 = vtanh.f32 %v876_v2  ;;  %v877_v45 = vmul.f32 0.5, %v876_v2 }
 0xc09   :  { %v805_v6 = vpop.f32.mrf.mxu3 }
 0xc0e   :  { %v1376_v40 = vpop.eup %1375 }
 0xc0f   :  { %884 = vrot.lane.b32.xlu1 %v1376_v40, %s1577_s25 }
 0xc27   :  { %v780_v41 = vpop.f32.mrf.mxu2 }
 0xc28   :  { %v806_v42 = vadd.f32 %v805_v6, %v780_v41 }
 0xc2a   :  { %v808_v43 = vadd.f32 %v1731_v37, %v806_v42 }
 0xc2c   :  { %1377 = vtanh.f32 %v808_v43  ;;  %v809_v51 = vmul.f32 0.5, %v808_v43 }
 0xc2d   :  { %1379 = vtanh.f32 %v877_v45 }
 0xc2e   :  { %1381 = vtanh.f32 %v809_v51 }
 0xc32   :  { %v1378_v44 = vpop.eup %1377 }
 0xc33   :  { %816 = vrot.lane.b32.xlu0 %v1378_v44, %s1577_s25  ;;  %v1380_v46 = vpop.eup %1379  ;;  %v1114_v44 = vld [vmem:[#allocation2 + $0x38] sm:$0xff] }
 0xc34   :  { %v879_v47 = vmul.f32 0.5, %v1380_v46  ;;  %v1382_v52 = vpop.eup %1381  ;;  %1305 = vmatmul.msk.f32.vlgmr.msrb.gmra.mxu0 %vm146_vm0, %v1114_v44 }
 0xc35   :  { %v811_v53 = vmul.f32 0.5, %v1382_v52 }
 0xc36   :  { %v880_v48 = vadd.f32 0.5, %v879_v47 }
 0xc37   :  { %v812_v54 = vadd.f32 0.5, %v811_v53 }
 0xc38   :  { %v882_v57 = vmul.f32 %v880_v48, %v1843_v19 }
 0xc39   :  { %v814_v61 = vmul.f32 %v812_v54, %v1848_v23 }
 0xc81   :  { %v885_v49 = vpop.permute.xlu1 %884 }
 0xc82   :  { %v887_v50 = vmul.f32 %v885_v49, %v880_v48 }
 0xc84   :  { %889 = vrot.lane.b32.xlu0 %v887_v50, %s1578_s26 }
 0xca5   :  { %v817_v55 = vpop.permute.xlu0 %816 }
 0xca6   :  { %v819_v56 = vmul.f32 %v817_v55, %v812_v54 }
 0xca8   :  { %821 = vrot.lane.b32.xlu2 %v819_v56, %s1578_s26 }
 0xcb1   :  { %v1155_v47 = vpop.f32.mrf.mxu0 }
 0xcf6   :  { %v890_v58 = vpop.permute.xlu0 %889 }
 0xcf7   :  { %v892_v59 = vadd.f32 %v890_v58, %v882_v57 }
 0xcf9   :  { %1383 = vtanh.f32 %v892_v59 }
 0xcff   :  { %v1384_v60 = vpop.eup %1383 }
 0xd00   :  { %895 = vrot.lane.b32.xlu2 %v1384_v60, %s1577_s25 }
 0xd02   :  { %v822_v62 = vpop.permute.xlu2 %821 }
 0xd03   :  { %v824_v63 = vadd.f32 %v822_v62, %v814_v61 }
 0xd05   :  { %1385 = vtanh.f32 %v824_v63 }
 0xd0b   :  { %v1386_v5 = vpop.eup %1385 }
 0xd0c   :  { %827 = vrot.lane.b32.xlu1 %v1386_v5, %s1577_s25 }
 0xd5a   :  { %v896_v7 = vpop.permute.xlu2 %895 }
 0xd5b   :  { %v898_v8 = vmul.f32 %v896_v7, %v880_v48 }
 0xd5d   :  { %925 = vrot.lane.b32.xlu1 %v898_v8, %s1578_s26 }
 0xd7e   :  { %v828_v10 = vpop.permute.xlu1 %827 }
 0xd7f   :  { %v830_v11 = vmul.f32 %v828_v10, %v812_v54 }
 0xd81   :  { %900 = vrot.lane.b32.xlu0 %v830_v11, %s1578_s26 }
 0xdcf   :  { %v926_v13 = vpop.permute.xlu1 %925 }
 0xdd0   :  { %1299 = vmatmul.msk.f32.vlgmr.msrb.gmra.mxu3 %vm122_vm1, %v926_v13  ;;  %1300 = vmatmul.msk.f32.vlgmr.msra.gmra.mxu1 %vm122_vm1, %v926_v13 }
 0xdd1   :  { %1223 = vmatpush.msrb.mxu3 %v1680_v25 }
 0xdd3   :  { %1224 = vmatpush.msrb.mxu3 %v1686_v27 }
 0xdd5   :  { %1225 = vmatpush.msrb.mxu3 %v1690_v29 }
 0xdd7   :  { %1226 = vmatpush.msrb.mxu3 %v1696_v31 }
 0xdf3   :  { %v901_v14 = vpop.permute.xlu0 %900 }
 0xdf4   :  { %1298 = vmatmul.msk.f32.vlgmr.msrb.gmra.mxu2 %vm122_vm1, %v901_v14 }
 0xdf5   :  { %1198 = vmatpush.msrb.mxu2 %v1678_v24 }
 0xdf7   :  { %1199 = vmatpush.msrb.mxu2 %v1682_v26 }
 0xdf9   :  { %1200 = vmatpush.msrb.mxu2 %v1688_v28 }
 0xdfb   :  { %1201 = vmatpush.msrb.mxu2 %v1694_v30 }
 0xe4d   :  { %v991_v16 = vpop.f32.mrf.mxu1 }
 0xe4e   :  { %v1015_v25 = vadd.f32 %v1014_v15, %v991_v16 }
 0xe50   :  { %v1017_v27 = vadd.f32 %v1669_v9, %v1015_v25 }
 0xe52   :  { %1387 = vtanh.f32 %v1017_v27  ;;  %v1018_v28 = vmul.f32 0.5, %v1017_v27 }
 0xe53   :  { %v946_v31 = vpop.f32.mrf.mxu3 }
 0xe58   :  { %v1388_v29 = vpop.eup %1387 }
 0xe59   :  { %1025 = vrot.lane.b32.xlu0 %v1388_v29, %s1577_s25 }
 0xe77   :  { %v921_v17 = vpop.f32.mrf.mxu2 }
 0xe78   :  { %v947_v18 = vadd.f32 %v946_v31, %v921_v17 }
 0xe7a   :  { %v949_v24 = vadd.f32 %v1731_v37, %v947_v18 }
 0xe7c   :  { %1389 = vtanh.f32 %v949_v24  ;;  %v950_v21 = vmul.f32 0.5, %v949_v24 }
 0xe7d   :  { %1391 = vtanh.f32 %v1018_v28 }
 0xe7e   :  { %1393 = vtanh.f32 %v950_v21 }
 0xe82   :  { %v1390_v26 = vpop.eup %1389 }
 0xe83   :  { %957 = vrot.lane.b32.xlu2 %v1390_v26, %s1577_s25  ;;  %v1392_v30 = vpop.eup %1391 }
 0xe84   :  { %v1020_v19 = vmul.f32 0.5, %v1392_v30  ;;  %v1394_v32 = vpop.eup %1393 }
 0xe85   :  { %v952_v33 = vmul.f32 0.5, %v1394_v32 }
 0xe86   :  { %v1021_v20 = vadd.f32 0.5, %v1020_v19 }
 0xe87   :  { %v953_v34 = vadd.f32 0.5, %v952_v33 }
 0xe88   :  { %v1023_v38 = vmul.f32 %v1021_v20, %v892_v59 }
 0xe89   :  { %v955_v1 = vmul.f32 %v953_v34, %v824_v63 }
 0xecb   :  { %v1026_v22 = vpop.permute.xlu0 %1025 }
 0xecc   :  { %v1028_v23 = vmul.f32 %v1026_v22, %v1021_v20 }
 0xece   :  { %1030 = vrot.lane.b32.xlu2 %v1028_v23, %s1578_s26 }
 0xedd   :  { %v958_v35 = vpop.permute.xlu2 %957 }
 0xede   :  { %v960_v36 = vmul.f32 %v958_v35, %v953_v34 }
 0xee0   :  { %962 = vrot.lane.b32.xlu1 %v960_v36, %s1578_s26 }
 0xf28   :  { %v1031_v39 = vpop.permute.xlu2 %1030 }
 0xf29   :  { %v1033_v3 = vadd.f32 %v1031_v39, %v1023_v38 }
 0xf2b   :  { %1395 = vtanh.f32 %v1033_v3 }
 0xf31   :  { %v1396_v0 = vpop.eup %1395 }
 0xf32   :  { %1036 = vrot.lane.b32.xlu1 %v1396_v0, %s1577_s25 }
 0xf52   :  { %v963_v4 = vpop.permute.xlu1 %962 }
 0xf53   :  { %v965_v2 = vadd.f32 %v963_v4, %v955_v1 }
 0xf55   :  { %1397 = vtanh.f32 %v965_v2 }
 0xf5b   :  { %v1398_v40 = vpop.eup %1397 }
 0xf5c   :  { %968 = vrot.lane.b32.xlu0 %v1398_v40, %s1577_s25 }
 0xfa4   :  { %v1037_v6 = vpop.permute.xlu1 %1036 }
 0xfa5   :  { %v1039_v41 = vmul.f32 %v1037_v6, %v1021_v20 }
 0xfa7   :  { %1066 = vrot.lane.b32.xlu0 %v1039_v41, %s1578_s26 }
 0xfce   :  { %v969_v42 = vpop.permute.xlu0 %968 }
 0xfcf   :  { %v971_v43 = vmul.f32 %v969_v42, %v953_v34 }
 0xfd1   :  { %1041 = vrot.lane.b32.xlu2 %v971_v43, %s1578_s26 }
0x1019   :  { %v1067_v45 = vpop.permute.xlu0 %1066 }
0x101a   :  { %1303 = vmatmul.msk.f32.vlgmr.msra.gmra.mxu3 %vm122_vm1, %v1067_v45  ;;  %1304 = vmatmul.msk.f32.vlgmr.msrb.gmra.mxu1 %vm122_vm1, %v1067_v45 }
0x102b   :  { %v1042_v46 = vpop.permute.xlu2 %1041 }
0x102c   :  { %1302 = vmatmul.msk.f32.vlgmr.msra.gmra.mxu2 %vm122_vm1, %v1042_v46 }
0x1097   :  { %v1132_v48 = vpop.f32.mrf.mxu1 }
0x1098   :  { %v1156_v49 = vadd.f32 %v1155_v47, %v1132_v48 }
0x109a   :  { %v1158_v50 = vadd.f32 %v1669_v9, %v1156_v49 }
0x109c   :  { %1399 = vtanh.f32 %v1158_v50  ;;  %v1159_v57 = vmul.f32 0.5, %v1158_v50 }
0x109d   :  { %v1087_v52 = vpop.f32.mrf.mxu3 }
0x10a2   :  { %v1400_v51 = vpop.eup %1399 }
0x10a3   :  { %1166 = vrot.lane.b32.xlu2 %v1400_v51, %s1577_s25 }
0x10af   :  { %v1062_v53 = vpop.f32.mrf.mxu2 }
0x10b0   :  { %v1088_v54 = vadd.f32 %v1087_v52, %v1062_v53 }
0x10b2   :  { %v1090_v55 = vadd.f32 %v1731_v37, %v1088_v54 }
0x10b4   :  { %1401 = vtanh.f32 %v1090_v55  ;;  %v1091_v62 = vmul.f32 0.5, %v1090_v55 }
0x10b5   :  { %1403 = vtanh.f32 %v1159_v57 }
0x10b6   :  { %1405 = vtanh.f32 %v1091_v62 }
0x10ba   :  { %v1402_v56 = vpop.eup %1401 }
0x10bb   :  { %1098 = vrot.lane.b32.xlu1 %v1402_v56, %s1577_s25  ;;  %v1404_v58 = vpop.eup %1403 }
0x10bc   :  { %v1161_v59 = vmul.f32 0.5, %v1404_v58  ;;  %v1406_v63 = vpop.eup %1405 }
0x10bd   :  { %v1093_v5 = vmul.f32 0.5, %v1406_v63 }
0x10be   :  { %v1162_v60 = vadd.f32 0.5, %v1161_v59 }
0x10bf   :  { %v1094_v7 = vadd.f32 0.5, %v1093_v5 }
0x10c0   :  { %v1164_v11 = vmul.f32 %v1162_v60, %v1033_v3 }
0x10c1   :  { %v1096_v15 = vmul.f32 %v1094_v7, %v965_v2 }
0x10fd   :  { %v1167_v61 = vpop.permute.xlu2 %1166 }
0x10fe   :  { %v1169_v9 = vmul.f32 %v1167_v61, %v1162_v60 }
0x1100   :  { %1171 = vrot.lane.b32.xlu1 %v1169_v9, %s1578_s26 }
0x112d   :  { %v1099_v8 = vpop.permute.xlu1 %1098 }
0x112e   :  { %v1101_v10 = vmul.f32 %v1099_v8, %v1094_v7 }
0x1130   :  { %1103 = vrot.lane.b32.xlu0 %v1101_v10, %s1578_s26 }
0x1172   :  { %v1172_v12 = vpop.permute.xlu1 %1171 }
0x1173   :  { %v1174_v13 = vadd.f32 %v1172_v12, %v1164_v11 }
0x1175   :  { %1407 = vtanh.f32 %v1174_v13 }
0x117b   :  { %v1408_v14 = vpop.eup %1407 }
0x117c   :  { %1177 = vrot.lane.b32.xlu0 %v1408_v14, %s1577_s25 }
0x11a2   :  { %v1104_v16 = vpop.permute.xlu0 %1103 }
0x11a3   :  { %v1106_v25 = vadd.f32 %v1104_v16, %v1096_v15 }
0x11a5   :  { %1409 = vtanh.f32 %v1106_v25 }
0x11ab   :  { %v1410_v27 = vpop.eup %1409 }
0x11ac   :  { %1109 = vrot.lane.b32.xlu2 %v1410_v27, %s1577_s25 }
0x11ee   :  { %v1178_v29 = vpop.permute.xlu0 %1177 }
0x11ef   :  { %v1180_v31 = vmul.f32 %v1178_v29, %v1162_v60 }
0x11f1   :  { %1207 = vrot.lane.b32.xlu2 %v1180_v31, %s1578_s26 }
0x1206   :  { %v1110_v17 = vpop.permute.xlu2 %1109 }
0x1207   :  { %v1112_v18 = vmul.f32 %v1110_v17, %v1094_v7 }
0x1209   :  { %1182 = vrot.lane.b32.xlu1 %v1112_v18, %s1578_s26 }
0x124b   :  { %v1208_v24 = vpop.permute.xlu2 %1207 }
0x124c   :  { %1307 = vmatmul.msk.f32.vlgmr.msrb.gmra.mxu3 %vm122_vm1, %v1208_v24 }
0x127b   :  { %v1183_v26 = vpop.permute.xlu1 %1182 }
0x127c   :  { %1306 = vmatmul.msk.f32.vlgmr.msrb.gmra.mxu2 %vm122_vm1, %v1183_v26 }
0x12cf   :  { %v1228_v28 = vpop.f32.mrf.mxu3 }
0x12ff   :  { %v1203_v30 = vpop.f32.mrf.mxu2 }
0x1300   :  { %v1229_v19 = vadd.f32 %v1228_v28, %v1203_v30 }
0x1302   :  { %v1231_v20 = vadd.f32 %v1731_v37, %v1229_v19 }
0x1304   :  { %1411 = vtanh.f32 %v1231_v20  ;;  %v1232_v22 = vmul.f32 0.5, %v1231_v20 }
0x1306   :  { %1413 = vtanh.f32 %v1232_v22 }
0x130a   :  { %v1412_v21 = vpop.eup %1411 }
0x130b   :  { %1239 = vrot.lane.b32.xlu0 %v1412_v21, %s1577_s25 }
0x130c   :  { %v1414_v23 = vpop.eup %1413 }
0x130d   :  { %v1234_v32 = vmul.f32 0.5, %v1414_v23 }
0x130f   :  { %v1235_v33 = vadd.f32 0.5, %v1234_v32 }
0x1311   :  { %v1237_v36 = vmul.f32 %v1235_v33, %v1106_v25 }
0x137d   :  { %v1240_v34 = vpop.permute.xlu0 %1239 }
0x137e   :  { %v1242_v35 = vmul.f32 %v1240_v34, %v1235_v33 }
0x1380   :  { %1244 = vrot.lane.b32.xlu1 %v1242_v35, %s1578_s26 }
0x13f2   :  { %v1245_v38 = vpop.permute.xlu1 %1244 }
0x13f3   :  { %v1247_v39 = vadd.f32 %v1245_v38, %v1237_v36 }
0x13f5   :  { %1415 = vtanh.f32 %v1247_v39 }
0x13fb   :  { %v1416_v3 = vpop.eup %1415 }
0x13fc   :  { %1250 = vrot.lane.b32.xlu2 %v1416_v3, %s1577_s25 }
0x1456   :  { %v1251_v37 = vpop.permute.xlu2 %1250 }
0x1457   :  { %v1253_v0 = vmul.f32 %v1251_v37, %v1235_v33 }
0x1459   :  { %1255 = vrot.lane.b32.xlu0 %v1253_v0, %s1578_s26 }
0x14cb   :  { %v1256_v1 = vpop.permute.xlu0 %1255 }
0x14cc   :  { %1258 = vst.msk [vmem:[#allocation11] sm:$0xff] %vm122_vm1, %v1256_v1 }
0x14cd   :  { %1269 = dma.vmem_to_hbm [thread:$0]  %s1265_s28, 128, %s1267_s8, [#allocation4]  }
0x14ce   :  { %1567 = dma.done.wait [#allocation4], 128  }
0x14cf   :  { %1568 = vsyncadd [#allocation4], 4294967168 }
0x14d0   :  { %1274 = vsyncpa [#allocation3], 1 }
0x14d1   :  { %1275 = vsyncpa [#allocation6], 1 }
0x14d2   :  { %1276 = vsyncpa [#allocation9], 1 }
0x14d3   :  { %1277 = vsyncpa [#allocation4], 1 }

</bundles_post_ra>
